<compile_context>
chip_gen: v7x
topology: tpu7x:2x2x1
jax: 0.10.0
libtpu: 0.0.40
codegen_flags: <defaults>
</compile_context>

<pallas_src>
import math
from functools import partial

import jax
import jax.numpy as jnp
from jax import lax
from jax.experimental import pallas as pl
from jax.experimental.pallas import tpu as pltpu


# ----------------------------------------------------------------------------
# tiling helpers
# ----------------------------------------------------------------------------
_SUBLANE_TILES = (256, 128, 64, 32, 16, 8)   # rows of the output tile
_LANE_TILES = (512, 256, 128)                # lane-dim tiles (must be x128 or full)


def _pick_tile(dim, candidates):
    for c in candidates:
        if dim % c == 0:
            return c
    return dim  # fall back to full dimension (always legal)


def _apply_act(x, activation):
    if activation == "tanh":
        return jnp.tanh(x)
    if activation == "silu":
        return x * jax.nn.sigmoid(x)
    return x


# ----------------------------------------------------------------------------
# Tiled matmul kernels (plain / token-shift-mix fused / gated)
# ----------------------------------------------------------------------------
def _matmul_kernel(a_ref, b_ref, o_ref, acc_ref, *, activation):
    @pl.when(pl.program_id(2) == 0)
    def _init():
        acc_ref[...] = jnp.zeros_like(acc_ref)

    acc_ref[...] += jnp.dot(a_ref[...].astype(jnp.bfloat16),
                            b_ref[...].astype(jnp.bfloat16),
                            preferred_element_type=jnp.float32)

    @pl.when(pl.program_id(2) == pl.num_programs(2) - 1)
    def _flush():
        o_ref[...] = _apply_act(acc_ref[...], activation).astype(o_ref.dtype)


def _mix_matmul_kernel(x_ref, xx_ref, m_ref, maa_ref, b_ref, o_ref, acc_ref, *,
                       activation):
    # lhs = x + xx * (maa + m)   (token-shift mix formed in VMEM, never in HBM)
    @pl.when(pl.program_id(2) == 0)
    def _init():
        acc_ref[...] = jnp.zeros_like(acc_ref)

    lhs = x_ref[...] + xx_ref[...] * (maa_ref[...] + m_ref[...])
    acc_ref[...] += jnp.dot(lhs.astype(jnp.bfloat16),
                            b_ref[...].astype(jnp.bfloat16),
                            preferred_element_type=jnp.float32)

    @pl.when(pl.program_id(2) == pl.num_programs(2) - 1)
    def _flush():
        o_ref[...] = _apply_act(acc_ref[...], activation).astype(o_ref.dtype)


def _gated_matmul_kernel(y_ref, g_ref, b_ref, o_ref, acc_ref):
    # lhs = ln_x(y) * g
    @pl.when(pl.program_id(2) == 0)
    def _init():
        acc_ref[...] = jnp.zeros_like(acc_ref)

    lhs = (y_ref[...].astype(jnp.float32) * g_ref[...]).astype(jnp.bfloat16)
    acc_ref[...] += jnp.dot(lhs, b_ref[...].astype(jnp.bfloat16),
                            preferred_element_type=jnp.float32)

    @pl.when(pl.program_id(2) == pl.num_programs(2) - 1)
    def _flush():
        o_ref[...] = acc_ref[...].astype(o_ref.dtype)


def _mm_call(kernel, lhs_like, rhs, extra_inputs, out_dtype):
    M, K = lhs_like.shape
    K2, N = rhs.shape
    assert K == K2
    tm = _pick_tile(M, _SUBLANE_TILES)
    tn = _pick_tile(N, (256, 128))
    tk = _pick_tile(K, _LANE_TILES)
    grid = (M // tm, N // tn, K // tk)
    lhs_spec = pl.BlockSpec((tm, tk), lambda i, j, k: (i, k))
    in_specs = [lhs_spec]
    args = [lhs_like]
    for arr, spec in extra_inputs:
        in_specs.append(spec if spec is not None else lhs_spec)
        args.append(arr)
    in_specs.append(pl.BlockSpec((tk, tn), lambda i, j, k: (k, j)))
    args.append(rhs)
    return pl.pallas_call(
        kernel,
        out_shape=jax.ShapeDtypeStruct((M, N), out_dtype),
        grid=grid,
        in_specs=in_specs,
        out_specs=pl.BlockSpec((tm, tn), lambda i, j, k: (i, j)),
        scratch_shapes=[pltpu.VMEM((tm, tn), jnp.float32)],
        compiler_params=pltpu.CompilerParams(
            dimension_semantics=("parallel", "parallel", "arbitrary")),
    )(*args)


def pallas_matmul(a, b, out_dtype=jnp.float32, activation=None):
    return _mm_call(partial(_matmul_kernel, activation=activation),
                    a, b, [], out_dtype)


def pallas_mix_matmul(x, xx, m, maa, b, out_dtype=jnp.float32, activation=None):
    maa_spec = pl.BlockSpec((1, maa.shape[1] if False else None), None)  # placeholder
    # maa is (1, K): tile over K only
    K = x.shape[1]
    tk = _pick_tile(K, _LANE_TILES)
    maa_spec = pl.BlockSpec((1, tk), lambda i, j, k: (0, k))
    return _mm_call(partial(_mix_matmul_kernel, activation=activation),
                    x, b, [(xx, None), (m, None), (maa, maa_spec)], out_dtype)


def pallas_gated_matmul(y, g, b, out_dtype=jnp.float32):
    return _mm_call(_gated_matmul_kernel, y, b, [(g, None)], out_dtype)


# ----------------------------------------------------------------------------
# Chunked WKV6 recurrence kernel (replaces wkv6_cuda.forward)
#
# Per head: state St[j, i] (j = key index, i = value index), St_0 = 0
#   y_t[i]    = sum_j r_t[j] * (u[j] * k_t[j] * v_t[i] + St_t[j, i])
#   St_{t+1}  = diag(exp(-exp(w_t))) @ St_t + k_t v_t^T
# Chunked over L timesteps with cumulative decays:
#   a_s = prod_{tau<s} w_tau ,  b_s = prod_{tau<=s} w_tau ,  WL = b_{L-1}
#   Y = (R*a) @ St_in  +  P_masked @ V ,   P[s,tau] = (R*a)[s] . (K/b)[tau]
#   (P strict-lower; diagonal = sum_j r u k);  St_out = diag(WL) St_in + (K*WL/b)^T V
# ----------------------------------------------------------------------------
def _wkv6_chunk_kernel(r_ref, k_ref, v_ref, w_ref, u_ref, y_ref, state_ref):
    # r/k/v/y: (1, L, H, N) bf16 ; w: (1, L, H, N) f32 (raw decay) ; u: (H, N) f32
    # state_ref: (H, N, N) f32, carried across the chunk grid axis
    L, H, N = r_ref.shape[1], r_ref.shape[2], r_ref.shape[3]

    @pl.when(pl.program_id(1) == 0)
    def _init():
        state_ref[...] = jnp.zeros_like(state_ref)

    r_t = r_ref[0].astype(jnp.float32)            # (L, H, N)
    k_t = k_ref[0].astype(jnp.float32)
    v_t = v_ref[0].astype(jnp.float32)
    w_t = w_ref[0]                                # (L, H, N) f32
    u_t = u_ref[...]                              # (H, N)    f32

    # causal structures, shared by all heads (prefix-sum done on the MXU)
    row = lax.broadcasted_iota(jnp.int32, (L, L), 0)
    col = lax.broadcasted_iota(jnp.int32, (L, L), 1)
    csum = (col <= row).astype(jnp.float32)       # inclusive prefix-sum operator
    below = col < row
    diag = col == row

    for h in range(H):                            # static unroll over heads
        r_h = r_t[:, h, :]                        # (L, N)
        k_h = k_t[:, h, :]
        v_h = v_t[:, h, :]
        u_h = u_t[h:h + 1, :]                     # (1, N)

        logw = -jnp.exp(w_t[:, h, :])             # log per-step decay (<= 0), f32
        clog = jnp.dot(csum, logw, preferred_element_type=jnp.float32)  # incl. cumsum
        tot = clog[L - 1:L, :]                    # (1, N) log total chunk decay
        dec_in = jnp.exp(clog - logw)             # a_s: decay applied to incoming state
        r_dec = r_h * dec_in                      # (L, N)
        k_b = k_h * jnp.exp(-clog)                # k_tau / b_tau
        k_c = k_h * jnp.exp(tot - clog)           # k_tau * (WL / b_tau)   (<= k)

        st = state_ref[h]                         # (N_j, N_i) f32

        y_inter = jnp.dot(r_dec, st, preferred_element_type=jnp.float32)   # (L, N)
        p = jnp.dot(r_dec, k_b.T, preferred_element_type=jnp.float32)      # (L, L)
        du = jnp.sum(r_h * u_h * k_h, axis=1, keepdims=True)               # (L, 1)
        p = jnp.where(below, p, 0.0) + jnp.where(diag, du, 0.0)
        y_h = y_inter + jnp.dot(p, v_h, preferred_element_type=jnp.float32)

        # carry state to the next chunk
        state_ref[h] = st * jnp.exp(tot).T + jnp.dot(
            k_c.T, v_h, preferred_element_type=jnp.float32)

        y_ref[0, :, h:h + 1, :] = y_h[:, None, :].astype(y_ref.dtype)


def wkv6(r, k, v, w, u, B, T, H, N):
    """r,k,v,w: (B*T, H*N); u: (H, N).  Returns (B, T, H*N) bf16."""
    L = next((c for c in (32, 16, 8) if T % c == 0), T)
    NC = T // L
    r4 = r.reshape(B, T, H, N).astype(jnp.bfloat16)
    k4 = k.reshape(B, T, H, N).astype(jnp.bfloat16)
    v4 = v.reshape(B, T, H, N).astype(jnp.bfloat16)
    w4 = w.reshape(B, T, H, N).astype(jnp.float32)   # decay stays in f32
    u2 = u.reshape(H, N).astype(jnp.float32)

    spec = pl.BlockSpec((1, L, H, N), lambda b, c: (b, c, 0, 0))
    y = pl.pallas_call(
        _wkv6_chunk_kernel,
        out_shape=jax.ShapeDtypeStruct((B, T, H, N), jnp.bfloat16),
        grid=(B, NC),
        in_specs=[spec, spec, spec, spec,
                  pl.BlockSpec((H, N), lambda b, c: (0, 0))],
        out_specs=spec,
        scratch_shapes=[pltpu.VMEM((H, N, N), jnp.float32)],
        compiler_params=pltpu.CompilerParams(
            dimension_semantics=("parallel", "arbitrary")),
    )(r4, k4, v4, w4, u2)
    return y.reshape(B, T, H * N)


# ----------------------------------------------------------------------------
# GroupNorm kernel (ln_x): row-tiled, per-head stats via indicator matmuls
# ----------------------------------------------------------------------------
def _groupnorm_kernel(x_ref, w_ref, b_ref, o_ref, *, n_head, head_size, eps):
    x = x_ref[...].astype(jnp.float32)                     # (tm, C)
    C = x.shape[1]
    ind = (lax.broadcasted_iota(jnp.int32, (C, n_head), 0) // head_size
           == lax.broadcasted_iota(jnp.int32, (C, n_head), 1)).astype(jnp.float32)
    ind_t = (lax.broadcasted_iota(jnp.int32, (n_head, C), 1) // head_size
             == lax.broadcasted_iota(jnp.int32, (n_head, C), 0)).astype(jnp.float32)
    inv_n = 1.0 / head_size
    mean = jnp.dot(x, ind, preferred_element_type=jnp.float32) * inv_n      # (tm, H)
    ex2 = jnp.dot(x * x, ind, preferred_element_type=jnp.float32) * inv_n   # (tm, H)
    rstd = lax.rsqrt(ex2 - mean * mean + eps)                               # (tm, H)
    mean_c = jnp.dot(mean, ind_t, preferred_element_type=jnp.float32)       # (tm, C)
    rstd_c = jnp.dot(rstd, ind_t, preferred_element_type=jnp.float32)       # (tm, C)
    y = (x - mean_c) * rstd_c * w_ref[...] + b_ref[...]
    o_ref[...] = y.astype(o_ref.dtype)


def pallas_groupnorm(x, weight, bias, n_head, eps, out_dtype=jnp.bfloat16):
    M, C = x.shape
    head_size = C // n_head
    tm = _pick_tile(M, (512, 256, 128, 64, 32, 16, 8))
    kernel = partial(_groupnorm_kernel, n_head=n_head, head_size=head_size, eps=eps)
    return pl.pallas_call(
        kernel,
        out_shape=jax.ShapeDtypeStruct((M, C), out_dtype),
        grid=(M // tm,),
        in_specs=[pl.BlockSpec((tm, C), lambda i: (i, 0)),
                  pl.BlockSpec((1, C), lambda i: (0, 0)),
                  pl.BlockSpec((1, C), lambda i: (0, 0))],
        out_specs=pl.BlockSpec((tm, C), lambda i: (i, 0)),
        compiler_params=pltpu.CompilerParams(dimension_semantics=("parallel",)),
    )(x, weight.reshape(1, C).astype(jnp.float32),
      bias.reshape(1, C).astype(jnp.float32))


# ----------------------------------------------------------------------------
# Parameter init (deterministic, mirrors shapes/formulas in the torch __init__)
# ----------------------------------------------------------------------------
def init_params(key, n_embd, dim_att, head_size, n_layer, layer_id):
    n_head = dim_att // head_size
    ratio_0_to_1 = layer_id / (n_layer - 1)
    ratio_1_to_almost0 = 1.0 - layer_id / n_layer

    ddd = (jnp.arange(n_embd, dtype=jnp.float32) / n_embd).reshape(1, 1, n_embd)
    D_MIX_LORA, D_DECAY_LORA = 32, 64
    keys = jax.random.split(key, 9)

    n_idx = jnp.arange(dim_att, dtype=jnp.float32)
    decay_speed = -6.0 + 5.0 * (n_idx / (dim_att - 1)) ** (0.7 + 1.3 * ratio_0_to_1)
    zigzag = ((n_idx + 1) % 3 - 1) * 0.1
    time_faaaa = (ratio_0_to_1 * (1 - n_idx / (dim_att - 1)) + zigzag).reshape(
        n_head, head_size)

    def linear_w(k, out_f, in_f):
        bound = 1.0 / math.sqrt(in_f)
        return jax.random.uniform(k, (out_f, in_f), jnp.float32, -bound, bound)

    # NOTE: time_maa_w1 / time_decay_w1 are zeros in the torch __init__ (untrained);
    # we use small random values so the LoRA path is actually exercised.
    return dict(
        time_maa_x=1.0 - jnp.power(ddd, ratio_1_to_almost0),
        time_maa_w=1.0 - jnp.power(ddd, ratio_1_to_almost0),
        time_maa_k=1.0 - jnp.power(ddd, ratio_1_to_almost0),
        time_maa_v=1.0 - (jnp.power(ddd, ratio_1_to_almost0) + 0.3 * ratio_0_to_1),
        time_maa_r=1.0 - jnp.power(ddd, 0.5 * ratio_1_to_almost0),
        time_maa_g=1.0 - jnp.power(ddd, 0.5 * ratio_1_to_almost0),
        time_maa_w1=jax.random.uniform(keys[0], (n_embd, D_MIX_LORA * 5),
                                       jnp.float32, -0.01, 0.01),
        time_maa_w2=jax.random.uniform(keys[1], (5, D_MIX_LORA, n_embd),
                                       jnp.float32, -0.01, 0.01),
        time_decay=decay_speed.reshape(1, 1, dim_att),
        time_decay_w1=jax.random.uniform(keys[2], (n_embd, D_DECAY_LORA),
                                         jnp.float32, -0.01, 0.01),
        time_decay_w2=jax.random.uniform(keys[3], (D_DECAY_LORA, dim_att),
                                         jnp.float32, -0.01, 0.01),
        time_faaaa=time_faaaa,
        W_r=linear_w(keys[4], dim_att, n_embd),
        W_k=linear_w(keys[5], dim_att, n_embd),
        W_v=linear_w(keys[6], dim_att, n_embd),
        W_o=linear_w(keys[7], n_embd, dim_att),
        W_g=linear_w(keys[8], dim_att, n_embd),
        ln_w=jnp.ones((dim_att,), jnp.float32),
        ln_b=jnp.zeros((dim_att,), jnp.float32),
    )


# ----------------------------------------------------------------------------
# Full forward (jit_func -> WKV6 -> jit_func_2)
# ----------------------------------------------------------------------------
def rwkv_tmix_forward(params, x, *, head_size, head_size_divisor=8):
    B, T, C = x.shape
    dim_att = params['W_r'].shape[0]
    H = dim_att // head_size
    M = B * T

    # token shift: nn.ZeroPad2d((0, 0, 1, -1)) on (B, T, C)
    x_shift = jnp.concatenate([jnp.zeros_like(x[:, :1, :]), x[:, :-1, :]], axis=1)
    xx = x_shift - x
    x2 = x.reshape(M, C)
    xx2 = xx.reshape(M, C)

    # ---- token-shift LoRA producing the 5 per-token mix coefficients ----
    xxx = x2 + xx2 * params['time_maa_x'].reshape(1, C)
    D_MIX = params['time_maa_w2'].shape[1]
    lora = pallas_matmul(xxx, params['time_maa_w1'], out_dtype=jnp.float32,
                         activation='tanh')                        # (M, 5*D_MIX)
    mixes = [pallas_matmul(lora[:, s * D_MIX:(s + 1) * D_MIX],
                           params['time_maa_w2'][s], out_dtype=jnp.float32)
             for s in range(5)]
    m_w, m_k, m_v, m_r, m_g = mixes

    # ---- fused (token-shift mix + projection) matmuls ----
    def proj(m, maa, W, out_dtype=jnp.float32, activation=None):
        return pallas_mix_matmul(x2, xx2, m, maa.reshape(1, C), W,
                                 out_dtype=out_dtype, activation=activation)

    r = proj(m_r, params['time_maa_r'], params['W_r'].T, out_dtype=jnp.bfloat16)
    k = proj(m_k, params['time_maa_k'], params['W_k'].T, out_dtype=jnp.bfloat16)
    v = proj(m_v, params['time_maa_v'], params['W_v'].T, out_dtype=jnp.bfloat16)
    g = proj(m_g, params['time_maa_g'], params['W_g'].T, out_dtype=jnp.float32,
             activation='silu')
    ww = pallas_matmul(
        proj(m_w, params['time_maa_w'], params['time_decay_w1'],
             out_dtype=jnp.float32, activation='tanh'),
        params['time_decay_w2'], out_dtype=jnp.float32)
    w = params['time_decay'].reshape(1, dim_att) + ww              # f32 (M, dim_att)

    # ---- WKV6 recurrence (bf16 r/k/v, f32 decay, f32 internal math) ----
    y = wkv6(r, k, v, w, params['time_faaaa'], B, T, H, head_size)  # (B,T,dim_att) bf16

    # ---- GroupNorm (ln_x) + gated output projection ----
    eps = 1e-5 * head_size_divisor ** 2
    yn = pallas_groupnorm(y.reshape(M, dim_att), params['ln_w'], params['ln_b'],
                          H, eps, out_dtype=jnp.bfloat16)
    out = pallas_gated_matmul(yn, g, params['W_o'].T, out_dtype=jnp.float32)
    return out.reshape(B, T, C)


# ----------------------------------------------------------------------------
# Pure-JAX serial reference for the WKV6 recurrence (for a self-check)
# ----------------------------------------------------------------------------
def wkv6_reference(r, k, v, w, u, B, T, H, N):
    r = r.reshape(B, T, H, N).astype(jnp.float32)
    k = k.reshape(B, T, H, N).astype(jnp.float32)
    v = v.reshape(B, T, H, N).astype(jnp.float32)
    dec = jnp.exp(-jnp.exp(w.reshape(B, T, H, N).astype(jnp.float32)))
    u = u.reshape(H, N).astype(jnp.float32)

    def step(state, inp):
        rt, kt, vt, wt = inp                               # each (B, H, N)
        y = (jnp.einsum('bhj,bhji->bhi', rt, state)
             + jnp.einsum('bhj,bhj->bh', rt * u, kt)[..., None] * vt)
        state = state * wt[..., :, None] + kt[..., :, None] * vt[..., None, :]
        return state, y

    state0 = jnp.zeros((B, H, N, N), jnp.float32)
    xs = tuple(a.transpose(1, 0, 2, 3) for a in (r, k, v, dec))
    _, ys = lax.scan(step, state0, xs)
    return ys.transpose(1, 0, 2, 3).reshape(B, T, H * N)


if __name__ == "__main__":
    B, T = 2, 8
    n_embd = 32
    dim_att = 32
    head_size = 16          # args.head_size_a
    n_layer = 4
    layer_id = 1
    H, N = dim_att // head_size, head_size

    key = jax.random.PRNGKey(0)
    pkey, xkey, rkey = jax.random.split(key, 3)
    params = init_params(pkey, n_embd, dim_att, head_size, n_layer, layer_id)
    x = jax.random.normal(xkey, (B, T, n_embd), dtype=jnp.float32)

    # --- self-check of the chunked WKV6 kernel against a serial scan (T=24 -> 3 chunks)
    Tc = 24
    ks = jax.random.split(rkey, 5)
    r_t = jax.random.normal(ks[0], (B * Tc, dim_att), jnp.float32).astype(jnp.bfloat16)
    k_t = jax.random.normal(ks[1], (B * Tc, dim_att), jnp.float32).astype(jnp.bfloat16)
    v_t = jax.random.normal(ks[2], (B * Tc, dim_att), jnp.float32).astype(jnp.bfloat16)
    w_t = -2.0 + 0.5 * jax.random.normal(ks[3], (B * Tc, dim_att), jnp.float32)
    u_t = 0.5 * jax.random.normal(ks[4], (H, N), jnp.float32)

    y_kern = jax.block_until_ready(
        jax.jit(partial(wkv6, B=B, T=Tc, H=H, N=N))(r_t, k_t, v_t, w_t, u_t))
    y_ref = wkv6_reference(r_t, k_t, v_t, w_t, u_t, B, Tc, H, N)
    err = float(jnp.max(jnp.abs(y_kern.astype(jnp.float32) - y_ref)))
    scale = float(jnp.max(jnp.abs(y_ref))) + 1e-6
    assert err <= 1e-2 + 2e-2 * scale, (err, scale)

    # --- full forward ---
    fwd = jax.jit(partial(rwkv_tmix_forward, head_size=head_size))
    out = jax.block_until_ready(fwd(params, x))

    assert out.shape == (B, T, n_embd)
    assert bool(jnp.all(jnp.isfinite(out)))
    print("KERNEL_OK")
</pallas_src>

<mosaic_0001>
module attributes {stable_mosaic.version = 11 : i64} {
  func.func @_wkv6_chunk_kernel(%arg0: i32, %arg1: i32, %arg2: memref<1x8x2x16xbf16, #tpu.memory_space<vmem>>, %arg3: memref<1x8x2x16xbf16, #tpu.memory_space<vmem>>, %arg4: memref<1x8x2x16xbf16, #tpu.memory_space<vmem>>, %arg5: memref<1x8x2x16xf32, #tpu.memory_space<vmem>>, %arg6: memref<2x16xf32, #tpu.memory_space<vmem>>, %arg7: memref<1x8x2x16xbf16, #tpu.memory_space<vmem>>, %arg8: memref<2x16x16xf32, #tpu.memory_space<vmem>>) attributes {dimension_semantics = [#tpu.dimension_semantics<parallel>, #tpu.dimension_semantics<arbitrary>], iteration_bounds = array<i64: 2, 3>, scalar_prefetch = 0 : i64, scratch_operands = 1 : i64, tpu.core_type = #tpu.core_type<tc>, window_params = [{transform_indices = @transform_0, window_bounds = array<i64: 1, 8, 2, 16>}, {transform_indices = @transform_1, window_bounds = array<i64: 1, 8, 2, 16>}, {transform_indices = @transform_2, window_bounds = array<i64: 1, 8, 2, 16>}, {transform_indices = @transform_3, window_bounds = array<i64: 1, 8, 2, 16>}, {pipeline_mode = #tpu.pipeline_mode<synchronous>, transform_indices = @transform_4, window_bounds = array<i64: 2, 16>}, {transform_indices = @transform_5, window_bounds = array<i64: 1, 8, 2, 16>}]} {
    %c0_i32 = arith.constant 0 : i32
    %0 = arith.cmpi eq, %arg1, %c0_i32 : i32
    %1 = arith.extui %0 : i1 to i32
    %c0_i32_0 = arith.constant 0 : i32
    %2 = arith.cmpi ne, %1, %c0_i32_0 : i32
    scf.if %2 {
      %cst_56 = arith.constant 0.000000e+00 : f32
      %140 = vector.broadcast %cst_56 : f32 to vector<2x16x16xf32>
      %c0_57 = arith.constant 0 : index
      %c0_58 = arith.constant 0 : index
      %c0_59 = arith.constant 0 : index
      %141 = vector.load %arg8[%c0_57, %c0_58, %c0_59] : memref<2x16x16xf32, #tpu.memory_space<vmem>>, vector<2x16x16xf32>
      tpu.vector_store %arg8[%c0_57, %c0_58, %c0_59], %140 {strides = array<i32>} : memref<2x16x16xf32, #tpu.memory_space<vmem>>, vector<2x16x16xf32>,
    } else {
    }
    %c0 = arith.constant 0 : index
    %c0_1 = arith.constant 0 : index
    %c0_2 = arith.constant 0 : index
    %c0_3 = arith.constant 0 : index
    %3 = vector.load %arg2[%c0, %c0_1, %c0_2, %c0_3] : memref<1x8x2x16xbf16, #tpu.memory_space<vmem>>, vector<1x8x2x16xbf16>
    %4 = vector.shape_cast %3 : vector<1x8x2x16xbf16> to vector<8x2x16xbf16>
    %5 = arith.extf %4 : vector<8x2x16xbf16> to vector<8x2x16xf32>
    %c0_4 = arith.constant 0 : index
    %c0_5 = arith.constant 0 : index
    %c0_6 = arith.constant 0 : index
    %c0_7 = arith.constant 0 : index
    %6 = vector.load %arg3[%c0_4, %c0_5, %c0_6, %c0_7] : memref<1x8x2x16xbf16, #tpu.memory_space<vmem>>, vector<1x8x2x16xbf16>
    %7 = vector.shape_cast %6 : vector<1x8x2x16xbf16> to vector<8x2x16xbf16>
    %8 = arith.extf %7 : vector<8x2x16xbf16> to vector<8x2x16xf32>
    %c0_8 = arith.constant 0 : index
    %c0_9 = arith.constant 0 : index
    %c0_10 = arith.constant 0 : index
    %c0_11 = arith.constant 0 : index
    %9 = vector.load %arg4[%c0_8, %c0_9, %c0_10, %c0_11] : memref<1x8x2x16xbf16, #tpu.memory_space<vmem>>, vector<1x8x2x16xbf16>
    %10 = vector.shape_cast %9 : vector<1x8x2x16xbf16> to vector<8x2x16xbf16>
    %11 = arith.extf %10 : vector<8x2x16xbf16> to vector<8x2x16xf32>
    %c0_12 = arith.constant 0 : index
    %c0_13 = arith.constant 0 : index
    %c0_14 = arith.constant 0 : index
    %c0_15 = arith.constant 0 : index
    %12 = vector.load %arg5[%c0_12, %c0_13, %c0_14, %c0_15] : memref<1x8x2x16xf32, #tpu.memory_space<vmem>>, vector<1x8x2x16xf32>
    %13 = vector.shape_cast %12 : vector<1x8x2x16xf32> to vector<8x2x16xf32>
    %c0_16 = arith.constant 0 : index
    %c0_17 = arith.constant 0 : index
    %14 = vector.load %arg6[%c0_16, %c0_17] : memref<2x16xf32, #tpu.memory_space<vmem>>, vector<2x16xf32>
    %15 = tpu.iota {dimensions = array<i32: 0>} : vector<8x8xi32>
    %16 = tpu.iota {dimensions = array<i32: 1>} : vector<8x8xi32>
    %17 = arith.cmpi sle, %16, %15 : vector<8x8xi32>
    %18 = arith.extui %17 : vector<8x8xi1> to vector<8x8xi32>
    %19 = arith.sitofp %18 : vector<8x8xi32> to vector<8x8xf32>
    %20 = arith.cmpi slt, %16, %15 : vector<8x8xi32>
    %21 = arith.cmpi eq, %16, %15 : vector<8x8xi32>
    %22 = vector.extract_strided_slice %5 {offsets = [0, 0, 0], sizes = [8, 1, 16], strides = [1, 1, 1]} : vector<8x2x16xf32> to vector<8x1x16xf32>
    %23 = vector.shape_cast %22 : vector<8x1x16xf32> to vector<8x16xf32>
    %24 = vector.extract_strided_slice %8 {offsets = [0, 0, 0], sizes = [8, 1, 16], strides = [1, 1, 1]} : vector<8x2x16xf32> to vector<8x1x16xf32>
    %25 = vector.shape_cast %24 : vector<8x1x16xf32> to vector<8x16xf32>
    %26 = vector.extract_strided_slice %11 {offsets = [0, 0, 0], sizes = [8, 1, 16], strides = [1, 1, 1]} : vector<8x2x16xf32> to vector<8x1x16xf32>
    %27 = vector.shape_cast %26 : vector<8x1x16xf32> to vector<8x16xf32>
    %28 = vector.extract_strided_slice %14 {offsets = [0, 0], sizes = [1, 16], strides = [1, 1]} : vector<2x16xf32> to vector<1x16xf32>
    %29 = vector.extract_strided_slice %13 {offsets = [0, 0, 0], sizes = [8, 1, 16], strides = [1, 1, 1]} : vector<8x2x16xf32> to vector<8x1x16xf32>
    %30 = vector.shape_cast %29 : vector<8x1x16xf32> to vector<8x16xf32>
    %31 = math.exp %30 : vector<8x16xf32>
    %cst = arith.constant 0.000000e+00 : f32
    %32 = vector.broadcast %cst : f32 to vector<8x16xf32>
    %33 = arith.subf %32, %31 : vector<8x16xf32>
    %cst_18 = arith.constant dense<0.000000e+00> : vector<8x16xf32>
    %34 = tpu.matmul %19, %33, %cst_18 {dimension_numbers = #tpu.dot_dimension_numbers<[1], [0], [0], [1], [0, 0, 1, 1], [], []>} : vector<8x8xf32>, vector<8x16xf32>, vector<8x16xf32> -> vector<8x16xf32>
    %35 = vector.extract_strided_slice %34 {offsets = [7, 0], sizes = [1, 16], strides = [1, 1]} : vector<8x16xf32> to vector<1x16xf32>
    %36 = arith.subf %34, %33 : vector<8x16xf32>
    %37 = math.exp %36 : vector<8x16xf32>
    %38 = arith.mulf %23, %37 : vector<8x16xf32>
    %cst_19 = arith.constant 0.000000e+00 : f32
    %39 = vector.broadcast %cst_19 : f32 to vector<8x16xf32>
    %40 = arith.subf %39, %34 : vector<8x16xf32>
    %41 = math.exp %40 : vector<8x16xf32>
    %42 = arith.mulf %25, %41 : vector<8x16xf32>
    %43 = vector.broadcast %35 : vector<1x16xf32> to vector<8x16xf32>
    %44 = arith.subf %43, %34 : vector<8x16xf32>
    %45 = math.exp %44 : vector<8x16xf32>
    %46 = arith.mulf %25, %45 : vector<8x16xf32>
    %c0_20 = arith.constant 0 : index
    %c0_21 = arith.constant 0 : index
    %c0_22 = arith.constant 0 : index
    %47 = vector.load %arg8[%c0_20, %c0_21, %c0_22] : memref<2x16x16xf32, #tpu.memory_space<vmem>>, vector<1x16x16xf32>
    %48 = vector.shape_cast %47 : vector<1x16x16xf32> to vector<16x16xf32>
    %cst_23 = arith.constant dense<0.000000e+00> : vector<8x16xf32>
    %49 = tpu.matmul %38, %48, %cst_23 {dimension_numbers = #tpu.dot_dimension_numbers<[1], [0], [0], [1], [0, 0, 1, 1], [], []>} : vector<8x16xf32>, vector<16x16xf32>, vector<8x16xf32> -> vector<8x16xf32>
    %50 = tpu.transpose %42, [1, 0] : vector<8x16xf32> -> vector<16x8xf32>
    %cst_24 = arith.constant dense<0.000000e+00> : vector<8x8xf32>
    %51 = tpu.matmul %38, %50, %cst_24 {dimension_numbers = #tpu.dot_dimension_numbers<[1], [0], [0], [1], [0, 0, 1, 1], [], []>} : vector<8x16xf32>, vector<16x8xf32>, vector<8x8xf32> -> vector<8x8xf32>
    %52 = vector.broadcast %28 : vector<1x16xf32> to vector<8x16xf32>
    %53 = arith.mulf %23, %52 : vector<8x16xf32>
    %54 = arith.mulf %53, %25 : vector<8x16xf32>
    %cst_25 = arith.constant dense<0.000000e+00> : vector<8xf32>
    %55 = vector.multi_reduction <add>, %54, %cst_25 [1] : vector<8x16xf32> to vector<8xf32>
    %56 = vector.shape_cast %55 : vector<8xf32> to vector<8x1xf32>
    %cst_26 = arith.constant 0.000000e+00 : f32
    %57 = vector.broadcast %cst_26 : f32 to vector<8x8xf32>
    %58 = arith.select %20, %51, %57 : vector<8x8xi1>, vector<8x8xf32>
    %cst_27 = arith.constant 0.000000e+00 : f32
    %59 = vector.shape_cast %56 : vector<8x1xf32> to vector<8x1xf32>
    %60 = vector.broadcast %59 : vector<8x1xf32> to vector<8x8xf32>
    %61 = vector.broadcast %cst_27 : f32 to vector<8x8xf32>
    %62 = arith.select %21, %60, %61 : vector<8x8xi1>, vector<8x8xf32>
    %63 = arith.addf %58, %62 : vector<8x8xf32>
    %cst_28 = arith.constant dense<0.000000e+00> : vector<8x16xf32>
    %64 = tpu.matmul %63, %27, %cst_28 {dimension_numbers = #tpu.dot_dimension_numbers<[1], [0], [0], [1], [0, 0, 1, 1], [], []>} : vector<8x8xf32>, vector<8x16xf32>, vector<8x16xf32> -> vector<8x16xf32>
    %65 = arith.addf %49, %64 : vector<8x16xf32>
    %66 = math.exp %35 : vector<1x16xf32>
    %67 = tpu.transpose %66, [1, 0] : vector<1x16xf32> -> vector<16x1xf32>
    %68 = vector.broadcast %67 : vector<16x1xf32> to vector<16x16xf32>
    %69 = arith.mulf %48, %68 : vector<16x16xf32>
    %70 = tpu.transpose %46, [1, 0] : vector<8x16xf32> -> vector<16x8xf32>
    %cst_29 = arith.constant dense<0.000000e+00> : vector<16x16xf32>
    %71 = tpu.matmul %70, %27, %cst_29 {dimension_numbers = #tpu.dot_dimension_numbers<[1], [0], [0], [1], [0, 0, 1, 1], [], []>} : vector<16x8xf32>, vector<8x16xf32>, vector<16x16xf32> -> vector<16x16xf32>
    %72 = arith.addf %69, %71 : vector<16x16xf32>
    %c0_30 = arith.constant 0 : index
    %c0_31 = arith.constant 0 : index
    %c0_32 = arith.constant 0 : index
    %73 = vector.load %arg8[%c0_30, %c0_31, %c0_32] : memref<2x16x16xf32, #tpu.memory_space<vmem>>, vector<1x16x16xf32>
    %74 = vector.shape_cast %73 : vector<1x16x16xf32> to vector<16x16xf32>
    %75 = vector.shape_cast %72 : vector<16x16xf32> to vector<1x16x16xf32>
    tpu.vector_store %arg8[%c0_30, %c0_31, %c0_32], %75 {strides = array<i32>} : memref<2x16x16xf32, #tpu.memory_space<vmem>>, vector<1x16x16xf32>,
    %76 = vector.shape_cast %65 : vector<8x16xf32> to vector<8x1x16xf32>
    %77 = arith.truncf %76 : vector<8x1x16xf32> to vector<8x1x16xbf16>
    %c0_33 = arith.constant 0 : index
    %c0_34 = arith.constant 0 : index
    %c0_35 = arith.constant 0 : index
    %c0_36 = arith.constant 0 : index
    %78 = vector.load %arg7[%c0_33, %c0_34, %c0_35, %c0_36] : memref<1x8x2x16xbf16, #tpu.memory_space<vmem>>, vector<1x8x1x16xbf16>
    %79 = vector.shape_cast %78 : vector<1x8x1x16xbf16> to vector<8x1x16xbf16>
    %80 = vector.shape_cast %77 : vector<8x1x16xbf16> to vector<1x8x1x16xbf16>
    tpu.vector_store %arg7[%c0_33, %c0_34, %c0_35, %c0_36], %80 {strides = array<i32>} : memref<1x8x2x16xbf16, #tpu.memory_space<vmem>>, vector<1x8x1x16xbf16>,
    %81 = vector.extract_strided_slice %5 {offsets = [0, 1, 0], sizes = [8, 1, 16], strides = [1, 1, 1]} : vector<8x2x16xf32> to vector<8x1x16xf32>
    %82 = vector.shape_cast %81 : vector<8x1x16xf32> to vector<8x16xf32>
    %83 = vector.extract_strided_slice %8 {offsets = [0, 1, 0], sizes = [8, 1, 16], strides = [1, 1, 1]} : vector<8x2x16xf32> to vector<8x1x16xf32>
    %84 = vector.shape_cast %83 : vector<8x1x16xf32> to vector<8x16xf32>
    %85 = vector.extract_strided_slice %11 {offsets = [0, 1, 0], sizes = [8, 1, 16], strides = [1, 1, 1]} : vector<8x2x16xf32> to vector<8x1x16xf32>
    %86 = vector.shape_cast %85 : vector<8x1x16xf32> to vector<8x16xf32>
    %87 = vector.extract_strided_slice %14 {offsets = [1, 0], sizes = [1, 16], strides = [1, 1]} : vector<2x16xf32> to vector<1x16xf32>
    %88 = vector.extract_strided_slice %13 {offsets = [0, 1, 0], sizes = [8, 1, 16], strides = [1, 1, 1]} : vector<8x2x16xf32> to vector<8x1x16xf32>
    %89 = vector.shape_cast %88 : vector<8x1x16xf32> to vector<8x16xf32>
    %90 = math.exp %89 : vector<8x16xf32>
    %cst_37 = arith.constant 0.000000e+00 : f32
    %91 = vector.broadcast %cst_37 : f32 to vector<8x16xf32>
    %92 = arith.subf %91, %90 : vector<8x16xf32>
    %cst_38 = arith.constant dense<0.000000e+00> : vector<8x16xf32>
    %93 = tpu.matmul %19, %92, %cst_38 {dimension_numbers = #tpu.dot_dimension_numbers<[1], [0], [0], [1], [0, 0, 1, 1], [], []>} : vector<8x8xf32>, vector<8x16xf32>, vector<8x16xf32> -> vector<8x16xf32>
    %94 = vector.extract_strided_slice %93 {offsets = [7, 0], sizes = [1, 16], strides = [1, 1]} : vector<8x16xf32> to vector<1x16xf32>
    %95 = arith.subf %93, %92 : vector<8x16xf32>
    %96 = math.exp %95 : vector<8x16xf32>
    %97 = arith.mulf %82, %96 : vector<8x16xf32>
    %cst_39 = arith.constant 0.000000e+00 : f32
    %98 = vector.broadcast %cst_39 : f32 to vector<8x16xf32>
    %99 = arith.subf %98, %93 : vector<8x16xf32>
    %100 = math.exp %99 : vector<8x16xf32>
    %101 = arith.mulf %84, %100 : vector<8x16xf32>
    %102 = vector.broadcast %94 : vector<1x16xf32> to vector<8x16xf32>
    %103 = arith.subf %102, %93 : vector<8x16xf32>
    %104 = math.exp %103 : vector<8x16xf32>
    %105 = arith.mulf %84, %104 : vector<8x16xf32>
    %c1 = arith.constant 1 : index
    %c0_40 = arith.constant 0 : index
    %c0_41 = arith.constant 0 : index
    %106 = vector.load %arg8[%c1, %c0_40, %c0_41] : memref<2x16x16xf32, #tpu.memory_space<vmem>>, vector<1x16x16xf32>
    %107 = vector.shape_cast %106 : vector<1x16x16xf32> to vector<16x16xf32>
    %cst_42 = arith.constant dense<0.000000e+00> : vector<8x16xf32>
    %108 = tpu.matmul %97, %107, %cst_42 {dimension_numbers = #tpu.dot_dimension_numbers<[1], [0], [0], [1], [0, 0, 1, 1], [], []>} : vector<8x16xf32>, vector<16x16xf32>, vector<8x16xf32> -> vector<8x16xf32>
    %109 = tpu.transpose %101, [1, 0] : vector<8x16xf32> -> vector<16x8xf32>
    %cst_43 = arith.constant dense<0.000000e+00> : vector<8x8xf32>
    %110 = tpu.matmul %97, %109, %cst_43 {dimension_numbers = #tpu.dot_dimension_numbers<[1], [0], [0], [1], [0, 0, 1, 1], [], []>} : vector<8x16xf32>, vector<16x8xf32>, vector<8x8xf32> -> vector<8x8xf32>
    %111 = vector.broadcast %87 : vector<1x16xf32> to vector<8x16xf32>
    %112 = arith.mulf %82, %111 : vector<8x16xf32>
    %113 = arith.mulf %112, %84 : vector<8x16xf32>
    %cst_44 = arith.constant dense<0.000000e+00> : vector<8xf32>
    %114 = vector.multi_reduction <add>, %113, %cst_44 [1] : vector<8x16xf32> to vector<8xf32>
    %115 = vector.shape_cast %114 : vector<8xf32> to vector<8x1xf32>
    %cst_45 = arith.constant 0.000000e+00 : f32
    %116 = vector.broadcast %cst_45 : f32 to vector<8x8xf32>
    %117 = arith.select %20, %110, %116 : vector<8x8xi1>, vector<8x8xf32>
    %cst_46 = arith.constant 0.000000e+00 : f32
    %118 = vector.shape_cast %115 : vector<8x1xf32> to vector<8x1xf32>
    %119 = vector.broadcast %118 : vector<8x1xf32> to vector<8x8xf32>
    %120 = vector.broadcast %cst_46 : f32 to vector<8x8xf32>
    %121 = arith.select %21, %119, %120 : vector<8x8xi1>, vector<8x8xf32>
    %122 = arith.addf %117, %121 : vector<8x8xf32>
    %cst_47 = arith.constant dense<0.000000e+00> : vector<8x16xf32>
    %123 = tpu.matmul %122, %86, %cst_47 {dimension_numbers = #tpu.dot_dimension_numbers<[1], [0], [0], [1], [0, 0, 1, 1], [], []>} : vector<8x8xf32>, vector<8x16xf32>, vector<8x16xf32> -> vector<8x16xf32>
    %124 = arith.addf %108, %123 : vector<8x16xf32>
    %125 = math.exp %94 : vector<1x16xf32>
    %126 = tpu.transpose %125, [1, 0] : vector<1x16xf32> -> vector<16x1xf32>
    %127 = vector.broadcast %126 : vector<16x1xf32> to vector<16x16xf32>
    %128 = arith.mulf %107, %127 : vector<16x16xf32>
    %129 = tpu.transpose %105, [1, 0] : vector<8x16xf32> -> vector<16x8xf32>
    %cst_48 = arith.constant dense<0.000000e+00> : vector<16x16xf32>
    %130 = tpu.matmul %129, %86, %cst_48 {dimension_numbers = #tpu.dot_dimension_numbers<[1], [0], [0], [1], [0, 0, 1, 1], [], []>} : vector<16x8xf32>, vector<8x16xf32>, vector<16x16xf32> -> vector<16x16xf32>
    %131 = arith.addf %128, %130 : vector<16x16xf32>
    %c1_49 = arith.constant 1 : index
    %c0_50 = arith.constant 0 : index
    %c0_51 = arith.constant 0 : index
    %132 = vector.load %arg8[%c1_49, %c0_50, %c0_51] : memref<2x16x16xf32, #tpu.memory_space<vmem>>, vector<1x16x16xf32>
    %133 = vector.shape_cast %132 : vector<1x16x16xf32> to vector<16x16xf32>
    %134 = vector.shape_cast %131 : vector<16x16xf32> to vector<1x16x16xf32>
    tpu.vector_store %arg8[%c1_49, %c0_50, %c0_51], %134 {strides = array<i32>} : memref<2x16x16xf32, #tpu.memory_space<vmem>>, vector<1x16x16xf32>,
    %135 = vector.shape_cast %124 : vector<8x16xf32> to vector<8x1x16xf32>
    %136 = arith.truncf %135 : vector<8x1x16xf32> to vector<8x1x16xbf16>
    %c0_52 = arith.constant 0 : index
    %c0_53 = arith.constant 0 : index
    %c1_54 = arith.constant 1 : index
    %c0_55 = arith.constant 0 : index
    %137 = vector.load %arg7[%c0_52, %c0_53, %c1_54, %c0_55] : memref<1x8x2x16xbf16, #tpu.memory_space<vmem>>, vector<1x8x1x16xbf16>
    %138 = vector.shape_cast %137 : vector<1x8x1x16xbf16> to vector<8x1x16xbf16>
    %139 = vector.shape_cast %136 : vector<8x1x16xbf16> to vector<1x8x1x16xbf16>
    tpu.vector_store %arg7[%c0_52, %c0_53, %c1_54, %c0_55], %139 {strides = array<i32>} : memref<1x8x2x16xbf16, #tpu.memory_space<vmem>>, vector<1x8x1x16xbf16>,
    return
  }
  func.func @transform_0(%arg0: i32, %arg1: i32) -> (i32, i32, i32, i32) {
    %c0_i32 = arith.constant 0 : i32
    %c0_i32_0 = arith.constant 0 : i32
    %c0_i32_1 = arith.constant 0 : i32
    return %arg0, %arg1, %c0_i32, %c0_i32_0 : i32, i32, i32, i32
  }
  func.func @transform_1(%arg0: i32, %arg1: i32) -> (i32, i32, i32, i32) {
    %c0_i32 = arith.constant 0 : i32
    %c0_i32_0 = arith.constant 0 : i32
    %c0_i32_1 = arith.constant 0 : i32
    return %arg0, %arg1, %c0_i32, %c0_i32_0 : i32, i32, i32, i32
  }
  func.func @transform_2(%arg0: i32, %arg1: i32) -> (i32, i32, i32, i32) {
    %c0_i32 = arith.constant 0 : i32
    %c0_i32_0 = arith.constant 0 : i32
    %c0_i32_1 = arith.constant 0 : i32
    return %arg0, %arg1, %c0_i32, %c0_i32_0 : i32, i32, i32, i32
  }
  func.func @transform_3(%arg0: i32, %arg1: i32) -> (i32, i32, i32, i32) {
    %c0_i32 = arith.constant 0 : i32
    %c0_i32_0 = arith.constant 0 : i32
    %c0_i32_1 = arith.constant 0 : i32
    return %arg0, %arg1, %c0_i32, %c0_i32_0 : i32, i32, i32, i32
  }
  func.func @transform_4(%arg0: i32, %arg1: i32) -> (i32, i32) {
    %c0_i32 = arith.constant 0 : i32
    %c0_i32_0 = arith.constant 0 : i32
    %c0_i32_1 = arith.constant 0 : i32
    return %c0_i32, %c0_i32_0 : i32, i32
  }
  func.func @transform_5(%arg0: i32, %arg1: i32) -> (i32, i32, i32, i32) {
    %c0_i32 = arith.constant 0 : i32
    %c0_i32_0 = arith.constant 0 : i32
    %c0_i32_1 = arith.constant 0 : i32
    return %arg0, %arg1, %c0_i32, %c0_i32_0 : i32, i32, i32, i32
  }
}

</mosaic_0001>

<bundles_post_ra>
// kernel: wkv6.1
= control target key start
LH: loop header
LB: loop body
LE: loop exit
PB: predicated region body
PF: predicated region fallthrough
CT: control target
= control target key end

     0   :  { %s3009_s18 = smov 0   ;;  %s3011_s19 = smov 0   ;;  %s3762_s0 = inlined_call_operand.vmem [shape: bf16[2,24,2,16], index: 0, kind: input, shape index: {}]   ;;  %s3763_s1 = inlined_call_operand.vmem [shape: bf16[2,24,2,16], index: 1, kind: input, shape index: {}]   ;;  %s3764_s2 = inlined_call_operand.vmem [shape: bf16[2,24,2,16], index: 2, kind: input, shape index: {}]   ;;  %s3765_s3 = inlined_call_operand.vmem [shape: f32[2,24,2,16], index: 3, kind: input, shape index: {}]   ;;  %s3766_s4 = inlined_call_operand.vmem [shape: f32[2,16], index: 4, kind: input, shape index: {}]   ;;  %s3767_s5 = inlined_call_operand.vmem [shape: bf16[2,24,2,16], index: 5, kind: output, shape index: {}]  }
   0x1   :  { %s3013_s20 = smov 0   ;;  %s3015_s21 = smov 0  }
   0x2   :  { %s3017_s22 = smov 0  }
   0x3 LB: > { %s24_s23 = sadd.s32 1, %s2962_s20  ;;  %s27_s24 = sadd.s32 1, %s2966_s21  ;;  %s2970_s22 = sphi %s3017_s22, %s15_s22   ;;  %s2966_s21 = sphi %s3015_s21, %s3801_s21   ;;  %s2962_s20 = sphi %s3013_s20, %s3800_s20   ;;  %s2958_s19 = sphi %s3011_s19, %s3799_s19   ;;  %s2954_s18 = sphi %s3009_s18, %s3798_s18  }
   0x4   : > { %p25_p0 = scmp.ge.s32.totalorder %s24_s23, 3  ;;  %p2737_p1 = scmp.ge.s32.totalorder %s2970_s22, 1 }
   0x5   : > { %p256_p2 = scmp.lt.s32.totalorder %s2970_s22, 7 }
   0x6   : > { %s3803_s23 = smov (%p25_p0, %s24_s23), 0  ;;  %s3805_s24 = smov (!%p25_p0, %s27_s24), %s2966_s21 }
   0x7   : > { %p257_p3 = pnand %p2737_p1, %p256_p2  ;;  %p29_p4 = scmp.ge.s32.totalorder %s3805_s24, 2 }
   0x8   : > { %s2738_s25 = sshll.u32 (!%p257_p3), %s2954_s18, 3  ;;  %p316_p5 = scmp.lt.s32.totalorder (!%p257_p3), %s2958_s19, 1 }
   0x9   : > { %s3807_s24 = smov (%p29_p4, %s3805_s24), 0  ;;  %260 = sbr.rel (%p257_p3) target bundleno = 1151 (0x47f), region = 40 }
   0xa   : > { %p318_p6 = scmp.lt.s32.totalorder (!%p257_p3), %s2738_s25, 23  ;;  %p2744_p7 = scmp.ne.s32.totalorder (!%p257_p3), %s2954_s18, 0 }
  0x10   : > { %s3809_s19 = smov (!%p316_p5, %s2958_s19), 1  ;;  %s3811_s25 = smov (!%p318_p6, %s2738_s25), 23 }
  0x11   : > { %s2850_s26 = smul.u32 24, %s3809_s19  ;;  %vm365_vm0 = vcmask (!%p2744_p7), 130048   ;;  %v2972_v0 = vmov (!%p2744_p7), 0.0  }
  0x12   : > { %364 = sbr.rel (%p2744_p7) target bundleno = 25 (0x19), region = 44  ;;  %366 = vst.msk [vmem:[#allocation2] sm:$0xff] (!%p2744_p7), %vm365_vm0, %v2972_v0  ;;  %367 = vst.msk [vmem:[#allocation2 + $0x8] sm:$0xff] (!%p2744_p7), %vm365_vm0, %v2972_v0 }
  0x13   : > { %s321_s27 = sadd.s32 %s2850_s26, %s3811_s25  ;;  %368 = vst.msk [vmem:[#allocation2 + $0x10] sm:$0xff] (!%p2744_p7), %vm365_vm0, %v2972_v0  ;;  %369 = vst.msk [vmem:[#allocation2 + $0x18] sm:$0xff] (!%p2744_p7), %vm365_vm0, %v2972_v0 }
  0x14   : > { %s3045_s30 = scalar_lea.vmem %s3762_s0, %s321_s27  ;;  %s3050_s8 = scalar_lea.vmem %s3763_s1, %s321_s27 }
  0x15   : > { %s3055_s11 = scalar_lea.vmem %s3764_s2, %s321_s27  ;;  %s2742_s12 = sshll.u32 %s321_s27, 1 }
  0x16   : > { %s350_s15 = scalar_lea.vmem %s3765_s3, %s2742_s12  ;;  %s3063_s19 = scalar_lea.vmem %s3767_s5, %s321_s27 }
  0x19 PF: > { %v418_v1 = vld [vmem:[%s350_s15] sm:$0x3]  ;;  %v419_v2 = vld [vmem:[%s350_s15 + $0x2] sm:$0x3]  ;;  %v2973_v3 = vmov 0.0   ;;  %vm2974_vm1 = vmmov 0   ;;  %v427_v19 = vlaneseq }
  0x1a   : > { %2786 = vmatprep.subr.mxu0 %v2973_v3  ;;  %v420_v4 = vld [vmem:[%s350_s15 + $0x4] sm:$0x3]  ;;  %v421_v5 = vld [vmem:[%s350_s15 + $0x6] sm:$0x3]  ;;  %2791 = vmatprep.subr.mxu1 %v2973_v3  ;;  %v422_v6 = vld [vmem:[%s350_s15 + $0x8] sm:$0x3] }
  0x1b   : > { %v423_v7 = vld [vmem:[%s350_s15 + $0xa] sm:$0x3]  ;;  %v436_v8 = vmul.f32 1.442695, %v418_v1  ;;  %v438_v9 = vmul.f32 1.442695, %v419_v2  ;;  %2788 = vmatprep.mubr.msk.f32.mxu0 %vm2974_vm1, %v2973_v3  ;;  %2793 = vmatprep.mubr.msk.f32.mxu1 %vm2974_vm1, %v2973_v3 }
  0x1c   : > { %v440_v10 = vmul.f32 1.442695, %v420_v4  ;;  %v424_v11 = vld [vmem:[%s350_s15 + $0xc] sm:$0x3]  ;;  %v442_v12 = vmul.f32 1.442695, %v421_v5 }
  0x1d   : > { %v425_v13 = vld [vmem:[%s350_s15 + $0xe] sm:$0x3]  ;;  %2900 = vpow2.f32 %v436_v8  ;;  %v444_v14 = vmul.f32 1.442695, %v422_v6  ;;  %v446_v15 = vmul.f32 1.442695, %v423_v7 }
  0x1e   : > { %2902 = vpow2.f32 %v438_v9  ;;  %v448_v16 = vmul.f32 1.442695, %v424_v11  ;;  %v450_v17 = vmul.f32 1.442695, %v425_v13  ;;  %vm469_vm2 = vcmask 1041409  }
  0x1f   : > { %2904 = vpow2.f32 %v440_v10  ;;  %vm472_vm3 = vcmask 1042434   ;;  %v3088_v29 = vshrl.u32 %v427_v19, 7  ;;  %v3090_v30 = vand.u32 127, %v427_v19  ;;  %v386_v1 = vld [vmem:[%s3050_s8] sm:$0x1] }
  0x20   : > { %2906 = vpow2.f32 %v442_v12  ;;  %vm475_vm4 = vcmask 1043459   ;;  %vm478_vm5 = vcmask 1044484   ;;  %vm481_vm6 = vcmask 1045509   ;;  %v387_v2 = vld [vmem:[%s3050_s8 + $0x1] sm:$0x1] }
  0x21   : > { %2908 = vpow2.f32 %v444_v14  ;;  %vm484_vm7 = vcmask 1046534   ;;  %vm431_vm8 = vcmp.le.s32.totalorder %v3090_v30, %v3088_v29  ;;  %vm487_vm9 = vcmask 1047559   ;;  %v388_v4 = vld [vmem:[%s3050_s8 + $0x2] sm:$0x1]  ;;  %v389_v5 = vld [vmem:[%s3050_s8 + $0x3] sm:$0x1] }
  0x22   : > { %2910 = vpow2.f32 %v446_v15  ;;  %v3125_v50 = vsel %vm431_vm8, 1.0, %v2973_v3  ;;  %vm490_vm10 = vcmask 64512   ;;  %v3768_v52 = vsub.s32 7, %v3088_v29  ;;  %v390_v6 = vld [vmem:[%s3050_s8 + $0x4] sm:$0x1] }
  0x23   : > { %2912 = vpow2.f32 %v448_v16  ;;  %v2975_v61 = vmov 1983009808   ;;  %v391_v7 = vld [vmem:[%s3050_s8 + $0x5] sm:$0x1]  ;;  %v392_v8 = vld [vmem:[%s3050_s8 + $0x6] sm:$0x1]  ;;  %v3159_v15 = vunpack.c.l.bf16 %v386_v1  ;;  %v3161_v16 = vunpack.c.l.bf16 %v387_v2 }
  0x24   : > { %2914 = vpow2.f32 %v450_v17  ;;  %v570_v62 = vunpack.c.l.s4 %v2975_v61  ;;  %v393_v9 = vld [vmem:[%s3050_s8 + $0x7] sm:$0x1]  ;;  %v370_v11 = vld [vmem:[%s3045_s30] sm:$0x1]  ;;  %v371_v12 = vld [vmem:[%s3045_s30 + $0x1] sm:$0x1]  ;;  %v3163_v17 = vunpack.c.l.bf16 %v388_v4  ;;  %vm435_vm14 = vcmp.eq.s32.totalorder %v3090_v30, %v3088_v29 }
  0x25   : > { %v372_v13 = vld [vmem:[%s3045_s30 + $0x2] sm:$0x1]  ;;  %v3157_v14 = vsub.s32 0, %v3088_v29  ;;  %v373_v19 = vld [vmem:[%s3045_s30 + $0x3] sm:$0x1]  ;;  %vm787_vm11 = vcmask 130048   ;;  %vm434_vm15 = vcmp.lt.s32.totalorder %v3090_v30, %v3088_v29 }
  0x26   : > { %v571_v0 = vunpack.c.0.s8 %v570_v62  ;;  %vm1945_vm12 = vcmask 130049   ;;  %vm1437_vm13 = vcmask 122880   ;;  %vm1438_vm0 = vsmask.f32 256 }
  0x27   : > { %v3072_v18 = vpop.eup %2900  ;;  %vm3599_vm8 = vmand %vm1437_vm13, %vm1438_vm0 }
  0x28   : > { %v3074_v20 = vpop.eup %2902  ;;  %v452_v22 = vsub.f32 0.0, %v3072_v18  ;;  %v3151_v10 = vsub.s32 %v571_v0, %v3088_v29 }
  0x29   : > { %v3076_v21 = vpop.eup %2904  ;;  %v453_v23 = vsub.f32 0.0, %v3074_v20 }
  0x2a   : > { %v3080_v24 = vpop.eup %2906  ;;  %v454_v25 = vsub.f32 0.0, %v3076_v21 }
  0x2b   : > { %v3083_v26 = vpop.eup %2908  ;;  %v3779_v27 = vsub.f32 0.0, %v3080_v24  ;;  %v468_v28 = vrot.slane %v453_v23, 7 }
  0x2c   : > { %v3092_v31 = vpop.eup %2910  ;;  %v3778_v32 = vsub.f32 0.0, %v3083_v26  ;;  %v471_v33 = vrot.slane %v454_v25, 6 }
  0x2d   : > { %v3097_v34 = vpop.eup %2912  ;;  %v3771_v35 = vsub.f32 0.0, %v3092_v31  ;;  %v470_v36 = vsel %vm469_vm2, %v468_v28, %v452_v22  ;;  %v474_v37 = vrot.slane %v3779_v27, 5  ;;  %v374_v28 = vld [vmem:[%s3045_s30 + $0x4] sm:$0x1] }
  0x2e   : > { %v3105_v38 = vpop.eup %2914  ;;  %v3770_v39 = vsub.f32 0.0, %v3097_v34  ;;  %v473_v40 = vsel %vm472_vm3, %v471_v33, %v470_v36  ;;  %v477_v41 = vrot.slane %v3778_v32, 4  ;;  %v3167_v33 = vunpack.c.l.bf16 %v389_v5 }
  0x2f   : > { %v3769_v42 = vsub.f32 0.0, %v3105_v38  ;;  %v476_v43 = vsel %vm475_vm4, %v474_v37, %v473_v40  ;;  %v480_v44 = vrot.slane %v3771_v35, 3  ;;  %v3169_v36 = vunpack.c.l.bf16 %v390_v6 }
  0x30   : > { %v479_v45 = vsel %vm478_vm5, %v477_v41, %v476_v43  ;;  %v483_v46 = vrot.slane %v3770_v39, 2  ;;  %v3171_v37 = vunpack.c.l.bf16 %v391_v7  ;;  %v3173_v40 = vunpack.c.l.bf16 %v392_v8  ;;  %v375_v41 = vld [vmem:[%s3045_s30 + $0x5] sm:$0x1]  ;;  %v376_v43 = vld [vmem:[%s3045_s30 + $0x6] sm:$0x1] }
  0x31   : > { %v482_v47 = vsel %vm481_vm6, %v480_v44, %v479_v45  ;;  %v486_v48 = vrot.slane %v3769_v42, 1  ;;  %v3177_v45 = vunpack.c.l.bf16 %v393_v9  ;;  %v3194_v61 = vunpack.c.l.bf16 %v375_v41 }
  0x32   : > { %v485_v49 = vsel %vm484_vm7, %v483_v46, %v482_v47  ;;  %v377_v46 = vld [vmem:[%s3045_s30 + $0x7] sm:$0x1]  ;;  %v3180_v47 = vunpack.c.l.bf16 %v370_v11  ;;  %v3196_v62 = vunpack.c.l.bf16 %v376_v43 }
  0x33   : > { %v488_v51 = vsel %vm487_vm9, %v486_v48, %v485_v49  ;;  %v3182_v48 = vunpack.c.l.bf16 %v371_v12  ;;  %v3184_v49 = vunpack.c.l.bf16 %v372_v13  ;;  %v3200_v2 = vunpack.c.l.bf16 %v377_v46 }
  0x34   : > { %2787 = vmatpush3.msra.mxu0 %v488_v51 }
  0x35   : > { %2789 = vmatmul.mubr.msk.f32.vlgmr.msra.gmra.mrb[0].mxu0 %vm490_vm10, %v3125_v50  ;;  %2796 = vmatprep.subr.mxu0 %v2973_v3 }
  0x36   : > { %2798 = vmatprep.mubr.msk.f32.mxu0 %vm2974_vm1, %v2973_v3 }
 0x108   : > { %v3134_v53 = vpop.f32.mrb[0].mxu0 }
 0x109   : > { %v564_v54 = vsub.f32 %v3134_v53, %v488_v51  ;;  %v605_v55 = vsub.f32 0.0, %v3134_v53  ;;  %v649_v56 = vrot.slane %v3134_v53, %v3768_v52  ;;  %v2790_v57 = vpop.f32.mrb[1].mxu0 }
 0x10b   : > { %v565_v58 = vmul.f32 1.442695, %v564_v54  ;;  %v606_v59 = vmul.f32 1.442695, %v605_v55  ;;  %v650_v60 = vsub.f32 %v649_v56, %v3134_v53  ;;  %v3189_v55 = vunpack.c.l.bf16 %v373_v19 }
 0x10c   : > { %v3191_v56 = vunpack.c.l.bf16 %v374_v28 }
 0x10d   : > { %2916 = vpow2.f32 %v565_v58  ;;  %v651_v63 = vmul.f32 1.442695, %v650_v60 }
 0x10e   : > { %2918 = vpow2.f32 %v606_v59 }
 0x10f   : > { %2920 = vpow2.f32 %v651_v63 }
 0x117   : > { %v2917_v44 = vpop.eup %2916 }
 0x118   : > { %v2919_v51 = vpop.eup %2918  ;;  %v3187_v54 = vrot.slane %v2917_v44, %v3151_v10  ;;  %v568_v57 = vcombine.high %v2917_v44, %v2917_v44 }
 0x119   : > { %v2921_v58 = vpop.eup %2920  ;;  %v616_v59 = vrot.slane %v2919_v51, %v3151_v10  ;;  %v609_v60 = vcombine.high %v2919_v51, %v2919_v51 }
 0x11a   : > { %v585_v63 = vrot.slane %v3187_v54, 1  ;;  %v661_v0 = vrot.slane %v2921_v58, %v3151_v10  ;;  %v654_v1 = vcombine.high %v2921_v58, %v2921_v58  ;;  %v3204_v7 = vrot.slane %v568_v57, %v3151_v10 }
 0x11b   : > { %v623_v4 = vrot.slane %v609_v60, %v3151_v10  ;;  %v624_v5 = vcombine.high %v616_v59, %v616_v59  ;;  %v626_v6 = vrot.slane %v616_v59, 1  ;;  %v638_v8 = vmul.f32 %v616_v59, %v3159_v15 }
 0x11c   : > { %v668_v9 = vrot.slane %v654_v1, %v3151_v10  ;;  %v669_v11 = vcombine.high %v661_v0, %v661_v0  ;;  %v671_v12 = vrot.slane %v661_v0, 1  ;;  %v683_v51 = vmul.f32 %v661_v0, %v3159_v15 }
 0x11d   : > { %v625_v13 = vcombine.high %v623_v4, %v623_v4  ;;  %v627_v19 = vrot.slane %v624_v5, 1  ;;  %v628_v28 = vrot.slane %v623_v4, 1  ;;  %v639_v41 = vmul.f32 %v626_v6, %v3161_v16 }
 0x11e   : > { %v640_v43 = vmul.f32 %v624_v5, %v3163_v17  ;;  %v642_v44 = vmul.f32 %v623_v4, %v3169_v36  ;;  %v670_v46 = vcombine.high %v668_v9, %v668_v9  ;;  %v751_v1 = vrot.slane %v638_v8, %v3157_v14 }
 0x11f   : > { %v629_v57 = vrot.slane %v625_v13, 1  ;;  %v641_v58 = vmul.f32 %v627_v19, %v3167_v33  ;;  %v643_v59 = vmul.f32 %v628_v28, %v3171_v37  ;;  %v644_v60 = vmul.f32 %v625_v13, %v3173_v40 }
 0x120   : > { %v755_v52 = vrot.slane %v639_v41, %v3157_v14  ;;  %v759_v6 = vrot.slane %v640_v43, %v3157_v14  ;;  %v672_v5 = vrot.slane %v669_v11, 1  ;;  %v767_v0 = vrot.slane %v642_v44, %v3157_v14 }
 0x121   : > { %v645_v4 = vmul.f32 %v629_v57, %v3177_v45  ;;  %v763_v42 = vrot.slane %v641_v58, %v3157_v14  ;;  %v771_v39 = vrot.slane %v643_v59, %v3157_v14  ;;  %v673_v28 = vrot.slane %v668_v9, 1 }
 0x122   : > { %v780_v19 = vsel %vm469_vm2, %v755_v52, %v751_v1  ;;  %v674_v35 = vrot.slane %v670_v46, 1  ;;  %v684_v13 = vmul.f32 %v671_v12, %v3161_v16  ;;  %v775_v8 = vrot.slane %v644_v60, %v3157_v14 }
 0x123   : > { %v781_v41 = vsel %vm472_vm3, %v759_v6, %v780_v19  ;;  %v685_v43 = vmul.f32 %v669_v11, %v3163_v17  ;;  %v686_v57 = vmul.f32 %v672_v5, %v3167_v33  ;;  %v687_v44 = vmul.f32 %v668_v9, %v3169_v36 }
 0x124   : > { %v782_v58 = vsel %vm475_vm4, %v763_v42, %v781_v41  ;;  %v688_v59 = vmul.f32 %v673_v28, %v3171_v37  ;;  %v689_v52 = vmul.f32 %v670_v46, %v3173_v40  ;;  %v779_v1 = vrot.slane %v645_v4, %v3157_v14 }
 0x125   : > { %v783_v12 = vsel %vm478_vm5, %v767_v0, %v782_v58  ;;  %v690_v60 = vmul.f32 %v674_v35, %v3177_v45  ;;  %v1221_v6 = vrot.slane %v684_v13, %v3157_v14  ;;  %v1217_v5 = vrot.slane %v683_v51, %v3157_v14 }
 0x126   : > { %v784_v11 = vsel %vm481_vm6, %v771_v39, %v783_v12  ;;  %v1225_v42 = vrot.slane %v685_v43, %v3157_v14  ;;  %v1229_v9 = vrot.slane %v686_v57, %v3157_v14  ;;  %v1233_v46 = vrot.slane %v687_v44, %v3157_v14 }
 0x127   : > { %v785_v19 = vsel %vm484_vm7, %v775_v8, %v784_v11  ;;  %v1237_v4 = vrot.slane %v688_v59, %v3157_v14  ;;  %v1241_v0 = vrot.slane %v689_v52, %v3157_v14  ;;  %v1246_v28 = vsel %vm469_vm2, %v1221_v6, %v1217_v5 }
 0x128   : > { %v786_v35 = vsel %vm487_vm9, %v779_v1, %v785_v19  ;;  %v583_v39 = vcombine.high %v3187_v54, %v3187_v54  ;;  %v584_v51 = vcombine.high %v3204_v7, %v3204_v7  ;;  %v1247_v13 = vsel %vm472_vm3, %v1225_v42, %v1246_v28 }
 0x129   : > { %2792 = vmatpush3.xpose.msk.msra.mxu1 %vm787_vm11, %v786_v35  ;;  %v587_v8 = vrot.slane %v3204_v7, 1  ;;  %v597_v41 = vmul.f32 %v3187_v54, %v3180_v47  ;;  %v598_v43 = vmul.f32 %v585_v63, %v3182_v48  ;;  %v1248_v57 = vsel %vm475_vm4, %v1229_v9, %v1247_v13  ;;  %v3268_v54 = vld [vmem:[%s3766_s4] sm:$0x3] }
 0x12a   : > { %v586_v58 = vrot.slane %v583_v39, 1  ;;  %v588_v44 = vrot.slane %v584_v51, 1  ;;  %v599_v59 = vmul.f32 %v583_v39, %v3184_v49  ;;  %v1249_v52 = vsel %vm478_vm5, %v1233_v46, %v1248_v57  ;;  %v3287_v13 = vld [vmem:[%s3055_s11] sm:$0x1]  ;;  %v3295_v57 = vld [vmem:[%s3055_s11 + $0x2] sm:$0x1] }
 0x12b   : > { %v601_v1 = vmul.f32 %v3204_v7, %v3191_v56  ;;  %v602_v12 = vmul.f32 %v587_v8, %v3194_v61  ;;  %v603_v6 = vmul.f32 %v584_v51, %v3196_v62  ;;  %v1245_v63 = vrot.slane %v690_v60, %v3157_v14  ;;  %v3290_v8 = vld [vmem:[%s3055_s11 + $0x1] sm:$0x1] }
 0x12c   : > { %v1250_v11 = vsel %vm481_vm6, %v1237_v4, %v1249_v52  ;;  %v600_v5 = vmul.f32 %v586_v58, %v3189_v55  ;;  %v604_v42 = vmul.f32 %v588_v44, %v3200_v2  ;;  %v704_v9 = vrot.slane %v597_v41, %v3157_v14  ;;  %v3298_v58 = vld [vmem:[%s3055_s11 + $0x3] sm:$0x1]  ;;  %v3301_v44 = vld [vmem:[%s3055_s11 + $0x4] sm:$0x1] }
 0x12d   : > { %v1251_v7 = vsel %vm484_vm7, %v1241_v0, %v1250_v11  ;;  %v708_v19 = vrot.slane %v598_v43, %v3157_v14  ;;  %v712_v46 = vrot.slane %v599_v59, %v3157_v14  ;;  %v865_v35 = vrot.slane %v3268_v54, %v3157_v14 }
 0x12e   : > { %v1252_v60 = vsel %vm487_vm9, %v1245_v63, %v1251_v7  ;;  %v716_v4 = vrot.slane %v600_v5, %v3157_v14  ;;  %v720_v0 = vrot.slane %v601_v1, %v3157_v14  ;;  %v724_v28 = vrot.slane %v602_v12, %v3157_v14  ;;  %v3307_v12 = vld [vmem:[%s3055_s11 + $0x5] sm:$0x1]  ;;  %v3313_v63 = vld [vmem:[%s3055_s11 + $0x7] sm:$0x1] }
 0x12f   : > { %1254 = vxpose.xlu0.b32.start.end [1/1] (short) (narrow) %v1252_v60, 16  ;;  %v728_v39 = vrot.slane %v603_v6, %v3157_v14  ;;  %v733_v51 = vsel %vm469_vm2, %v708_v19, %v704_v9  ;;  %v732_v41 = vrot.slane %v604_v42, %v3157_v14  ;;  %v3772_v59 = vunpack.c.l.bf16 %v3287_v13  ;;  %v3310_v6 = vld [vmem:[%s3055_s11 + $0x6] sm:$0x1] }
 0x130   : > { %v734_v43 = vsel %vm472_vm3, %v712_v46, %v733_v51  ;;  %v3773_v52 = vunpack.c.l.bf16 %v3290_v8  ;;  %v3774_v11 = vunpack.c.l.bf16 %v3295_v57  ;;  %v3777_v5 = vunpack.c.l.bf16 %v3298_v58 }
 0x131   : > { %v735_v1 = vsel %vm475_vm4, %v716_v4, %v734_v43  ;;  %v3775_v42 = vunpack.c.l.bf16 %v3301_v44  ;;  %v3776_v9 = vunpack.c.l.bf16 %v3307_v12  ;;  %v3780_v19 = vunpack.c.l.bf16 %v3310_v6 }
 0x132   : > { %v736_v7 = vsel %vm478_vm5, %v720_v0, %v735_v1  ;;  %v417_v46 = vunpack.c.l.bf16 %v3313_v63  ;;  %v977_v4 = vrot.slane %v3772_v59, %v3157_v14  ;;  %v981_v51 = vrot.slane %v3773_v52, %v3157_v14 }
 0x133   : > { %v737_v60 = vsel %vm481_vm6, %v724_v28, %v736_v7  ;;  %v985_v0 = vrot.slane %v3774_v11, %v3157_v14  ;;  %v874_v1 = vrot.slane %v865_v35, %v3151_v10  ;;  %v989_v28 = vrot.slane %v3777_v5, %v3157_v14 }
 0x134   : > { %v738_v43 = vsel %vm484_vm7, %v728_v39, %v737_v60  ;;  %v993_v7 = vrot.slane %v3775_v42, %v3157_v14  ;;  %v997_v52 = vrot.slane %v3776_v9, %v3157_v14  ;;  %v1006_v11 = vsel %vm469_vm2, %v981_v51, %v977_v4 }
 0x135   : > { %v3341_v59 = vsel %vm487_vm9, %v732_v41, %v738_v43  ;;  %v1001_v39 = vrot.slane %v3780_v19, %v3157_v14  ;;  %v1007_v60 = vsel %vm472_vm3, %v985_v0, %v1006_v11  ;;  %v1005_v41 = vrot.slane %v417_v46, %v3157_v14 }
 0x136   : > { %2794 = vmatmul.mubr.msk.f32.vlgmr.msra.gmra.mrb[0].mxu1 %vm787_vm11, %v3341_v59  ;;  %v1008_v43 = vsel %vm475_vm4, %v989_v28, %v1007_v60  ;;  %v884_v42 = vrot.slane %v874_v1, 1  ;;  %v882_v51 = vcombine.high %v874_v1, %v874_v1  ;;  %v867_v27 = vcombine.high %v865_v35, %v865_v35 }
 0x137   : > { %v1009_v9 = vsel %vm478_vm5, %v993_v7, %v1008_v43  ;;  %v896_v19 = vmul.f32 %v874_v1, %v3180_v47 }
 0x138   : > { %v1010_v4 = vsel %vm481_vm6, %v997_v52, %v1009_v9  ;;  %v897_v11 = vmul.f32 %v884_v42, %v3182_v48  ;;  %v885_v0 = vrot.slane %v882_v51, 1  ;;  %v898_v28 = vmul.f32 %v882_v51, %v3184_v49 }
 0x139   : > { %v1011_v5 = vsel %vm484_vm7, %v1001_v39, %v1010_v4  ;;  %v881_v52 = vrot.slane %v867_v27, %v3151_v10  ;;  %v904_v9 = vmul.f32 %v896_v19, %v3159_v15 }
 0x13a   : > { %v1012_v32 = vsel %vm487_vm9, %v1005_v41, %v1011_v5  ;;  %v905_v7 = vmul.f32 %v897_v11, %v3161_v16  ;;  %v899_v35 = vmul.f32 %v885_v0, %v3189_v55  ;;  %v906_v5 = vmul.f32 %v898_v28, %v3163_v17 }
 0x13b   : > { %2808 = vmatprep.subr.mxu1 %v1012_v32  ;;  %2797 = vmatpush3.msra.mxu0 %v1012_v32  ;;  %v886_v1 = vrot.slane %v881_v52, 1  ;;  %v923_v42 = vrot.slane %v904_v9, %v3157_v14  ;;  %v900_v39 = vmul.f32 %v881_v52, %v3191_v56  ;;  %v883_v60 = vcombine.high %v881_v52, %v881_v52 }
 0x13c   : > { %2809 = vmatpush3.msra.mxu1 %v1012_v32  ;;  %v927_v32 = vrot.slane %v905_v7, %v3157_v14  ;;  %v907_v41 = vmul.f32 %v899_v35, %v3167_v33  ;;  %v931_v27 = vrot.slane %v906_v5, %v3157_v14 }
 0x13d   : > { %2813 = vmatprep.subr.mxu1 %v2973_v3  ;;  %v901_v19 = vmul.f32 %v886_v1, %v3194_v61  ;;  %v908_v4 = vmul.f32 %v900_v39, %v3169_v36  ;;  %v887_v51 = vrot.slane %v883_v60, 1  ;;  %v902_v0 = vmul.f32 %v883_v60, %v3196_v62 }
 0x13e   : > { %v952_v43 = vsel %vm469_vm2, %v927_v32, %v923_v42  ;;  %v935_v11 = vrot.slane %v907_v41, %v3157_v14 }
 0x13f   : > { %v953_v28 = vsel %vm472_vm3, %v931_v27, %v952_v43  ;;  %v909_v9 = vmul.f32 %v901_v19, %v3171_v37  ;;  %v939_v52 = vrot.slane %v908_v4, %v3157_v14  ;;  %v903_v7 = vmul.f32 %v887_v51, %v3200_v2 }
 0x140   : > { %v954_v35 = vsel %vm475_vm4, %v935_v11, %v953_v28  ;;  %v910_v5 = vmul.f32 %v902_v0, %v3173_v40  ;;  %v1157_v4 = vmul.f32 1.442695, %v3134_v53  ;;  %v2976_v0 = vmov 0.0|0.0  }
 0x141   : > { %v943_v1 = vrot.slane %v909_v9, %v3157_v14  ;;  %v955_v42 = vsel %vm478_vm5, %v939_v52, %v954_v35  ;;  %v911_v32 = vmul.f32 %v903_v7, %v3177_v45  ;;  %2840 = vmatprep.subr.bf16.mxu0 %v2976_v0  ;;  %v3398_v28 = vsub.s32 1, %v3088_v29 }
 0x142   : > { %v947_v39 = vrot.slane %v910_v5, %v3157_v14  ;;  %2922 = vpow2.f32 %v1157_v4 }
 0x143   : > { %v956_v60 = vsel %vm481_vm6, %v943_v1, %v955_v42  ;;  %v951_v41 = vrot.slane %v911_v32, %v3157_v14  ;;  %v1850_v14 = vrot.slane %v3268_v54, %v3398_v28  ;;  %v1464_v1 = vrot.slane %v452_v22, 1 }
 0x144   : > { %v957_v27 = vsel %vm484_vm7, %v947_v39, %v956_v60  ;;  %v1466_v54 = vrot.slane %v454_v25, 7 }
 0x145   : > { %v958_v19 = vsel %vm487_vm9, %v951_v41, %v957_v27  ;;  %v1852_v9 = vcombine.high %v1850_v14, %v1850_v14  ;;  %v1859_v52 = vrot.slane %v1850_v14, %v3151_v10 }
 0x146   : > { %v960_v43 = vsel %vm787_vm11, %v958_v19, 0.0 }
 0x147   : > { %v1866_v7 = vrot.slane %v1852_v9, %v3151_v10  ;;  %v1867_v35 = vcombine.high %v1859_v52, %v1859_v52  ;;  %v1869_v53 = vrot.slane %v1859_v52, 7  ;;  %v1882_v5 = vmul.f32 %v1859_v52, %v3182_v48 }
 0x149   : > { %v1868_v42 = vcombine.high %v1866_v7, %v1866_v7  ;;  %v1870_v32 = vrot.slane %v1867_v35, 7  ;;  %v1871_v39 = vrot.slane %v1866_v7, 7  ;;  %v1881_v60 = vmul.f32 %v1869_v53, %v3180_v47 }
 0x14a   : > { %v1884_v41 = vmul.f32 %v1867_v35, %v3189_v55  ;;  %v1886_v27 = vmul.f32 %v1866_v7, %v3194_v61  ;;  %v1890_v19 = vmul.f32 %v1882_v5, %v3161_v16  ;;  %v1465_v35 = vsel %vm469_vm2, %v453_v23, %v1464_v1 }
 0x14b   : > { %v1883_v4 = vmul.f32 %v1870_v32, %v3184_v49  ;;  %v1885_v18 = vmul.f32 %v1871_v39, %v3191_v56  ;;  %v1889_v22 = vmul.f32 %v1881_v60, %v3159_v15  ;;  %v1888_v25 = vmul.f32 %v1868_v42, %v3200_v2 }
 0x14c   : > { %v2923_v51 = vpop.eup %2922  ;;  %v1912_v21 = vrot.slane %v1890_v19, %v3398_v28  ;;  %v3781_v60 = vsub.f32 0.0, %v3080_v24  ;;  %v1467_v20 = vsel %vm472_vm3, %v1466_v54, %v1465_v35 }
 0x14d   : > { %v1160_v11 = vrot.slane %v2923_v51, 7  ;;  %v1892_v51 = vmul.f32 %v1884_v41, %v3167_v33  ;;  %v1891_v9 = vmul.f32 %v1883_v4, %v3163_v17  ;;  %v1893_v52 = vmul.f32 %v1885_v18, %v3169_v36 }
 0x14e   : > { %v1908_v7 = vrot.slane %v1889_v22, %v3398_v28  ;;  %v1468_v41 = vrot.slane %v3781_v60, 6  ;;  %v1896_v19 = vmul.f32 %v1888_v25, %v3177_v45  ;;  %v3782_v4 = vsub.f32 0.0, %v3083_v26  ;;  %v3472_v60 = vld [vmem:[#allocation2] sm:$0xff] }
 0x14f   : > { %v1920_v53 = vrot.slane %v1892_v51, %v3398_v28  ;;  %v1916_v32 = vrot.slane %v1891_v9, %v3398_v28 }
 0x150   : > { %v1937_v39 = vsel %vm472_vm3, %v1912_v21, %v1908_v7  ;;  %v1470_v18 = vrot.slane %v3782_v4, 5  ;;  %v1469_v24 = vsel %vm475_vm4, %v1468_v41, %v1467_v20  ;;  %v3783_v21 = vsub.f32 0.0, %v3092_v31  ;;  %v692_v41 = vld [vmem:[#allocation2 + $0x8] sm:$0xff] }
 0x151   : > { %v1938_v1 = vsel %vm475_vm4, %v1916_v32, %v1937_v39 }
 0x152   : > { %v1472_v25 = vrot.slane %v3783_v21, 4  ;;  %v1471_v9 = vsel %vm478_vm5, %v1470_v18, %v1469_v24 }
 0x154   : > { %v1473_v35 = vsel %vm481_vm6, %v1472_v25, %v1471_v9 }
 0x160   : > { %961 = vadd.xlane.f32.xlu0 %v960_v43  ;;  %v1872_v43 = vrot.slane %v1868_v42, 7  ;;  %v1924_v42 = vrot.slane %v1893_v52, %v3398_v28  ;;  %v3784_v52 = vsub.f32 0.0, %v3097_v34  ;;  %v2977_v34 = vmov 0  }
 0x162   : > { %v1887_v14 = vmul.f32 %v1872_v43, %v3196_v62  ;;  %v1939_v43 = vsel %vm478_vm5, %v1920_v53, %v1938_v1  ;;  %v1474_v7 = vrot.slane %v3784_v52, 3  ;;  %v3785_v53 = vsub.f32 0.0, %v3105_v38 }
 0x163   : > { %v1940_v22 = vsel %vm481_vm6, %v1924_v42, %v1939_v43 }
 0x164   : > { %v1895_v5 = vmul.f32 %v1887_v14, %v3173_v40  ;;  %v1475_v42 = vsel %vm484_vm7, %v1474_v7, %v1473_v35 }
 0x166   : > { %v1932_v23 = vrot.slane %v1895_v5, %v3398_v28  ;;  %v1476_v5 = vrot.slane %v3785_v53, 2 }
 0x168   : > { %v1477_v31 = vsel %vm487_vm9, %v1476_v5, %v1475_v42 }
 0x18d   : > { %1162 = vxpose.xlu0.b32.start.end [1/1] (short) (narrow) %v1160_v11, 16  ;;  %v1894_v11 = vmul.f32 %v1886_v27, %v3171_v37 }
 0x18f   : > { %v1928_v27 = vrot.slane %v1894_v11, %v3398_v28  ;;  %v1936_v11 = vrot.slane %v1896_v19, %v3398_v28 }
 0x191   : > { %v1941_v51 = vsel %vm484_vm7, %v1928_v27, %v1940_v22  ;;  %v1950_v26 = vsel %vm1437_vm13, %v1936_v11, 0.0 }
 0x192   : > { %v1942_v54 = vsel %vm487_vm9, %v1932_v23, %v1941_v51  ;;  %v2841_v23 = vpack.c.bf16 %v692_v41, %v3472_v60 }
 0x193   : > { %v1946_v14 = vsel %vm1945_vm12, %v1942_v54, 0.0  ;;  %v3786_v54 = vsub.s32 7, %v3088_v29 }
 0x194   : > { %1947 = vadd.xlane.f32.xlu1 %v1946_v14 }
 0x198   : > { %1951 = vadd.xlane.f32.xlu1 %v1950_v26 }
 0x1af   : > { %v1270_v32 = vpop.trf.xlu0 }
 0x1b0   : > { %2810 = vmatprep.mubr.msk.f32.mxu1 %vm490_vm10, %v1270_v32 }
 0x1b3   : > { %v1271_v39 = vpop.trf.xlu0 }
 0x1b4   : > { %2811 = vmatmul.mubr.msk.f32.vlgmr.msra.gmra.mrb[2].mxu1 %vm490_vm10, %v1271_v39 }
 0x1b5   : > { %2814 = vmatpush3.msra.mxu1 %v1477_v31  ;;  %2815 = vmatprep.mubr.msk.f32.mxu1 %vm2974_vm1, %v2973_v3 }
 0x1b6   : > { %2899 = vset.pattern.permute.xlu0 %v2977_v34  ;;  %2823 = vmatprep.subr.mxu1 %v2973_v3 }
 0x1b8   : > { %2816 = vmatmul.mubr.msk.f32.vlgmr.msra.gmra.mrb[4].mxu1 %vm490_vm10, %v3125_v50 }
 0x1b9   : > { %2825 = vmatprep.mubr.msk.f32.mxu1 %vm2974_vm1, %v2973_v3 }
 0x1ed   : > { %v962_v38 = vpop.xlane.xlu0 %961 }
 0x1ee   : > { %v964_v27 = vsel %vm435_vm14, %v962_v38, 0.0 }
 0x209   : > { %v858_v19 = vpop.f32.mrb[0].mxu1 }
 0x20a   : > { %v963_v50 = vsel %vm434_vm15, %v858_v19, 0.0  ;;  %v2795_v20 = vpop.f32.mrb[1].mxu1 }
 0x20b   : > { %v965_v1 = vadd.f32 %v964_v27, %v963_v50 }
 0x20d   : > { %2799 = vmatmul.mubr.msk.f32.vlgmr.msra.gmra.mrb[2].mxu0 %vm490_vm10, %v965_v1  ;;  %v3482_v43 = vpop.trf.xlu0 }
 0x20e   : > { %2842 = vmatpush3.bf16.msra.mxu0 %v2841_v23  ;;  %2805 = vmatprep.mubr.msk.f32.mxu0 %vm2974_vm1, %v2973_v3 }
 0x20f   : > { %2818 = vmatprep.subr.mxu0 %v2973_v3 }
 0x211   : > { %v1179_v4 = vpop.trf.xlu0 }
 0x212   : > { %1201 = vperm.xlu0 %2899, %v1179_v4  }
 0x215   : > { %2806 = vmatmul.mubr.msk.f32.vlgmr.msra.gmra.mrb[2].mxu0 %vm787_vm11, %v3341_v59 }
 0x216   : > { %2820 = vmatprep.mubr.msk.f32.mxu0 %vm2974_vm1, %v2973_v3 }
 0x287   : > { %v2812_v18 = vpop.f32.mrb[2].mxu1 }
 0x288   : > { %v3491_v22 = vpop.f32.mrb[3].mxu1 }
 0x28b   : > { %v1545_v24 = vpop.f32.mrb[4].mxu1 }
 0x28c   : > { %v1549_v51 = vsub.f32 %v1545_v24, %v1477_v31  ;;  %v1590_v11 = vsub.f32 0.0, %v1545_v24  ;;  %v1634_v21 = vrot.slane %v1545_v24, %v3786_v54  ;;  %v2817_v25 = vpop.f32.mrb[5].mxu1  ;;  %v2146_v53 = vmul.f32 1.442695, %v1545_v24 }
 0x28e   : > { %v1550_v14 = vmul.f32 1.442695, %v1549_v51  ;;  %v1591_v9 = vmul.f32 1.442695, %v1590_v11  ;;  %v1635_v26 = vsub.f32 %v1634_v21, %v1545_v24 }
 0x290   : > { %2924 = vpow2.f32 %v1550_v14  ;;  %v1636_v52 = vmul.f32 1.442695, %v1635_v26 }
 0x291   : > { %2926 = vpow2.f32 %v1591_v9  ;;  %v1202_v59 = vpop.permute.xlu0 %1201 }
 0x292   : > { %2928 = vpow2.f32 %v1636_v52  ;;  %v1205_v7 = vmul.f32 %v1202_v59, %v692_v41 }
 0x293   : > { %2930 = vpow2.f32 %v2146_v53 }
 0x294   : > { %v1368_v35 = vadd.f32 %v2812_v18, %v1205_v7 }
 0x296   : > { %1370 = vst.msk [vmem:[#allocation2 + $0x8] sm:$0xff] %vm787_vm11, %v1368_v35 }
 0x29a   : > { %v3496_v5 = vpop.eup %2924 }
 0x29b   : > { %v2927_v32 = vpop.eup %2926  ;;  %v3500_v42 = vrot.slane %v3496_v5, %v3151_v10  ;;  %v1553_v41 = vcombine.high %v3496_v5, %v3496_v5 }
 0x29c   : > { %v2929_v31 = vpop.eup %2928  ;;  %v1594_v39 = vcombine.high %v2927_v32, %v2927_v32  ;;  %v1601_v38 = vrot.slane %v2927_v32, %v3151_v10 }
 0x29d   : > { %v1646_v27 = vrot.slane %v2929_v31, %v3151_v10  ;;  %v1639_v19 = vcombine.high %v2929_v31, %v2929_v31  ;;  %v1570_v1 = vrot.slane %v3500_v42, 7  ;;  %v3513_v25 = vmul.f32 %v3500_v42, %v3182_v48 }
 0x29e   : > { %v1611_v50 = vrot.slane %v1601_v38, 7  ;;  %v1608_v20 = vrot.slane %v1594_v39, %v3151_v10  ;;  %v1609_v23 = vcombine.high %v1601_v38, %v1601_v38  ;;  %v1624_v4 = vmul.f32 %v1601_v38, %v3161_v16 }
 0x29f   : > { %v1653_v18 = vrot.slane %v1639_v19, %v3151_v10  ;;  %v1654_v24 = vcombine.high %v1646_v27, %v1646_v27  ;;  %v1656_v26 = vrot.slane %v1646_v27, 7  ;;  %v1669_v35 = vmul.f32 %v1646_v27, %v3161_v16 }
 0x2a0   : > { %v1610_v51 = vcombine.high %v1608_v20, %v1608_v20  ;;  %v1612_v11 = vrot.slane %v1609_v23, 7  ;;  %v1613_v54 = vrot.slane %v1608_v20, 7  ;;  %v1623_v21 = vmul.f32 %v1611_v50, %v3159_v15 }
 0x2a1   : > { %v1626_v14 = vmul.f32 %v1609_v23, %v3167_v33  ;;  %v1655_v9 = vcombine.high %v1653_v18, %v1653_v18  ;;  %v1628_v53 = vmul.f32 %v1608_v20, %v3171_v37  ;;  %v1741_v32 = vrot.slane %v1624_v4, %v3398_v28 }
 0x2a2   : > { %v1614_v52 = vrot.slane %v1610_v51, 7  ;;  %v1625_v59 = vmul.f32 %v1612_v11, %v3163_v17  ;;  %v1627_v7 = vmul.f32 %v1613_v54, %v3169_v36  ;;  %v1737_v5 = vrot.slane %v1623_v21, %v3398_v28  ;;  %v2931_v21 = vpop.eup %2930 }
 0x2a3   : > { %v1657_v31 = vrot.slane %v1654_v24, 7  ;;  %v1630_v39 = vmul.f32 %v1610_v51, %v3177_v45  ;;  %v1749_v19 = vrot.slane %v1626_v14, %v3398_v28  ;;  %v1658_v23 = vrot.slane %v1653_v18, 7 }
 0x2a4   : > { %v1629_v48 = vmul.f32 %v1614_v52, %v3173_v40  ;;  %v1745_v38 = vrot.slane %v1625_v59, %v3398_v28  ;;  %v1766_v50 = vsel %vm469_vm2, %v1741_v32, %v1737_v5  ;;  %v1659_v11 = vrot.slane %v1655_v9, 7 }
 0x2a5   : > { %v1668_v16 = vmul.f32 %v1656_v26, %v3159_v15  ;;  %v1753_v27 = vrot.slane %v1627_v7, %v3398_v28  ;;  %v1670_v4 = vmul.f32 %v1657_v31, %v3163_v17  ;;  %v1671_v54 = vmul.f32 %v1654_v24, %v3167_v33 }
 0x2a6   : > { %v1767_v20 = vsel %vm472_vm3, %v1745_v38, %v1766_v50  ;;  %v1757_v51 = vrot.slane %v1628_v53, %v3398_v28  ;;  %v1761_v52 = vrot.slane %v1629_v48, %v3398_v28  ;;  %v1672_v59 = vmul.f32 %v1658_v23, %v3169_v36 }
 0x2a7   : > { %v1768_v14 = vsel %vm475_vm4, %v1749_v19, %v1767_v20  ;;  %v1673_v15 = vmul.f32 %v1653_v18, %v3171_v37  ;;  %v1674_v26 = vmul.f32 %v1659_v11, %v3173_v40  ;;  %v2206_v7 = vrot.slane %v1668_v16, %v3398_v28 }
 0x2a8   : > { %v1769_v5 = vsel %vm478_vm5, %v1753_v27, %v1768_v14  ;;  %v1765_v17 = vrot.slane %v1630_v39, %v3398_v28  ;;  %v2210_v24 = vrot.slane %v1669_v35, %v3398_v28  ;;  %v2214_v53 = vrot.slane %v1670_v4, %v3398_v28 }
 0x2a9   : > { %v1770_v33 = vsel %vm481_vm6, %v1757_v51, %v1769_v5  ;;  %v1675_v36 = vmul.f32 %v1655_v9, %v3177_v45  ;;  %v2218_v31 = vrot.slane %v1671_v54, %v3398_v28  ;;  %v2222_v37 = vrot.slane %v1672_v59, %v3398_v28 }
 0x2aa   : > { %v1771_v32 = vsel %vm484_vm7, %v1761_v52, %v1770_v33  ;;  %v2235_v18 = vsel %vm469_vm2, %v2210_v24, %v2206_v7  ;;  %v1567_v48 = vrot.slane %v1553_v41, %v3151_v10  ;;  %v1568_v39 = vcombine.high %v3500_v42, %v3500_v42 }
 0x2ab   : > { %v1772_v40 = vsel %vm487_vm9, %v1765_v17, %v1771_v32  ;;  %v2226_v35 = vrot.slane %v1673_v15, %v3398_v28  ;;  %v2230_v38 = vrot.slane %v1674_v26, %v3398_v28  ;;  %v2236_v45 = vsel %vm472_vm3, %v2214_v53, %v2235_v18 }
 0x2ac   : > { %2819 = vmatpush3.xpose.msk.msra.mxu0 %vm787_vm11, %v1772_v40  ;;  %v1582_v9 = vmul.f32 %v1570_v1, %v3180_v47  ;;  %v2237_v19 = vsel %vm475_vm4, %v2218_v31, %v2236_v45  ;;  %v1569_v50 = vcombine.high %v1567_v48, %v1567_v48  ;;  %v1571_v23 = vrot.slane %v1568_v39, 7 }
 0x2ad   : > { %v1572_v11 = vrot.slane %v1567_v48, 7  ;;  %v2234_v10 = vrot.slane %v1675_v36, %v3398_v28  ;;  %v2238_v41 = vsel %vm478_vm5, %v2222_v37, %v2237_v19  ;;  %v1585_v42 = vmul.f32 %v1568_v39, %v3189_v55  ;;  %v1440_v19 = vld [vmem:[%s3063_s19] sm:$0x1] }
 0x2ae   : > { %v1690_v16 = vrot.slane %v1582_v9, %v3398_v28  ;;  %v2239_v27 = vsel %vm481_vm6, %v2226_v35, %v2238_v41  ;;  %v1573_v20 = vrot.slane %v1569_v50, 7  ;;  %v1584_v4 = vmul.f32 %v1571_v23, %v3184_v49 }
 0x2af   : > { %v1586_v47 = vmul.f32 %v1572_v11, %v3191_v56  ;;  %v2240_v1 = vsel %vm484_vm7, %v2230_v38, %v2239_v27  ;;  %v1587_v54 = vmul.f32 %v1567_v48, %v3194_v61  ;;  %v1694_v51 = vrot.slane %v3513_v25, %v3398_v28  ;;  %v1452_v27 = vld [vmem:[%s3063_s19 + $0x4] sm:$0x1] }
 0x2b0   : > { %v2241_v52 = vsel %vm487_vm9, %v2234_v10, %v2240_v1  ;;  %v1588_v55 = vmul.f32 %v1573_v20, %v3196_v62  ;;  %v1698_v14 = vrot.slane %v1584_v4, %v3398_v28  ;;  %v1589_v59 = vmul.f32 %v1569_v50, %v3200_v2  ;;  %v1449_v1 = vld [vmem:[%s3063_s19 + $0x3] sm:$0x1] }
 0x2b1   : > { %2243 = vxpose.xlu1.b32.start.end [1/1] (short) (narrow) %v2241_v52, 16  ;;  %v1702_v49 = vrot.slane %v1585_v42, %v3398_v28  ;;  %v1719_v56 = vsel %vm469_vm2, %v1694_v51, %v1690_v16  ;;  %v1706_v5 = vrot.slane %v1586_v47, %v3398_v28  ;;  %v1710_v15 = vrot.slane %v1587_v54, %v3398_v28  ;;  %v1443_v42 = vld [vmem:[%s3063_s19 + $0x1] sm:$0x1]  ;;  %v1446_v16 = vld [vmem:[%s3063_s19 + $0x2] sm:$0x1] }
 0x2b2   : > { %v1720_v61 = vsel %vm472_vm3, %v1698_v14, %v1719_v56  ;;  %v1714_v26 = vrot.slane %v1588_v55, %v3398_v28  ;;  %v2149_v7 = vrot.slane %v2931_v21, 7  ;;  %v1718_v17 = vrot.slane %v1589_v59, %v3398_v28  ;;  %v1455_v54 = vld [vmem:[%s3063_s19 + $0x5] sm:$0x1]  ;;  %v1458_v51 = vld [vmem:[%s3063_s19 + $0x6] sm:$0x1] }
 0x2b3   : > { %v1721_v25 = vsel %vm475_vm4, %v1702_v49, %v1720_v61  ;;  %v2978_v53 = vmov 1966171168   ;;  %v1461_v61 = vld [vmem:[%s3063_s19 + $0x7] sm:$0x1] }
 0x2b4   : > { %v1722_v62 = vsel %vm478_vm5, %v1706_v5, %v1721_v25  ;;  %v1374_v32 = vunpack.c.l.s4 %v2978_v53 }
 0x2b5   : > { %v1723_v2 = vsel %vm481_vm6, %v1710_v15, %v1722_v62 }
 0x2b6   : > { %v1724_v33 = vsel %vm484_vm7, %v1714_v26, %v1723_v2  ;;  %2151 = vxpose.xlu1.b32.start.end [1/1] (short) (narrow) %v2149_v7, 16  ;;  %v1375_v21 = vunpack.c.0.s8 %v1374_v32  ;;  %v3791_v32 = vunpack.c.l.bf16 %v3295_v57  ;;  %v3795_v57 = vunpack.c.l.bf16 %v3310_v6 }
 0x2b7   : > { %v3586_v24 = vsel %vm487_vm9, %v1718_v17, %v1724_v33  ;;  %v3789_v17 = vunpack.c.l.bf16 %v3287_v13  ;;  %v3790_v33 = vunpack.c.l.bf16 %v3290_v8  ;;  %v3794_v8 = vunpack.c.l.bf16 %v3307_v12  ;;  %v1948_v12 = vpop.xlane.xlu1 %1947 }
 0x2b8   : > { %2821 = vmatmul.mubr.msk.f32.vlgmr.msra.gmra.mrb[4].mxu0 %vm787_vm11, %v3586_v24  ;;  %v3593_v36 = vsub.s32 %v1375_v21, %v3088_v29  ;;  %v1974_v21 = vrot.slane %v3791_v32, %v3398_v28 }
 0x2b9   : > { %v1966_v2 = vrot.slane %v3789_v17, %v3398_v28  ;;  %v1970_v53 = vrot.slane %v3790_v33, %v3398_v28 }
 0x2bb   : > { %v1952_v6 = vpop.xlane.xlu1 %1951 }
 0x2d4   : > { %2898 = vset.pattern.permute.xlu1 %v2977_v34 }
 0x2d8   : > { %1196 = vperm.xlu1 %2898, %v3482_v43  }
 0x2e8   : > { %v1153_v31 = vpop.f32.mrb[2].mxu0 }
 0x2e9   : > { %v1372_v37 = vcombine.high %v1153_v31, %v1153_v31  ;;  %v1379_v40 = vrot.slane %v1153_v31, %v3593_v36  ;;  %v2807_v18 = vpop.f32.mrb[3].mxu0  ;;  %v3792_v31 = vunpack.c.l.bf16 %v3298_v58  ;;  %v1994_v58 = vrot.slane %v417_v46, %v3398_v28 }
 0x2ea   : > { %v3793_v18 = vunpack.c.l.bf16 %v3301_v44 }
 0x2eb   : > { %v1386_v48 = vrot.slane %v1372_v37, %v3593_v36  ;;  %v1387_v34 = vcombine.high %v1379_v40, %v1379_v40  ;;  %v1395_v43 = vrot.slane %v1379_v40, %v3593_v36  ;;  %v1978_v37 = vrot.slane %v3792_v31, %v3398_v28 }
 0x2ec   : > { %v1995_v40 = vsel %vm469_vm2, %v1970_v53, %v1966_v2  ;;  %vm1956_vm2 = vcmask 1046528  }
 0x2ed   : > { %v1388_v35 = vcombine.high %v1386_v48, %v1386_v48  ;;  %v1402_v38 = vrot.slane %v1386_v48, %v3593_v36  ;;  %v1409_v45 = vrot.slane %v1387_v34, %v3593_v36  ;;  %v1417_v9 = vcombine.high %v1395_v43, %v1395_v43 }
 0x2ee   : > { %v1429_v50 = vpack.c.bf16 %v1395_v43, %v1395_v43  ;;  %v1982_v48 = vrot.slane %v3793_v18, %v3398_v28  ;;  %v1996_v13 = vsel %vm472_vm3, %v1974_v21, %v1995_v40  ;;  %v1986_v34 = vrot.slane %v3794_v8, %v3398_v28 }
 0x2ef   : > { %v1416_v23 = vrot.slane %v1388_v35, %v3593_v36  ;;  %v1418_v11 = vcombine.high %v1402_v38, %v1402_v38  ;;  %v1419_v10 = vcombine.high %v1409_v45, %v1409_v45  ;;  %v1430_v41 = vpack.c.bf16 %v1409_v45, %v1409_v45 }
 0x2f0   : > { %v1431_v20 = vpack.c.bf16 %v1417_v9, %v1417_v9  ;;  %v1433_v4 = vpack.c.bf16 %v1402_v38, %v1402_v38  ;;  %v1441_v47 = vsel %vm3599_vm8, %v1429_v50, %v1440_v19  ;;  %v1990_v43 = vrot.slane %v3795_v57, %v3398_v28 }
 0x2f1   : > { %v1420_v52 = vcombine.high %v1416_v23, %v1416_v23  ;;  %v1432_v55 = vpack.c.bf16 %v1419_v10, %v1419_v10  ;;  %v1434_v14 = vpack.c.bf16 %v1416_v23, %v1416_v23  ;;  %v1435_v59 = vpack.c.bf16 %v1418_v11, %v1418_v11  ;;  %1442 = vst [vmem:[%s3063_s19] sm:$0x1] %v1441_v47 }
 0x2f2   : > { %v1444_v49 = vsel %vm3599_vm8, %v1430_v41, %v1443_v42  ;;  %v1447_v56 = vsel %vm3599_vm8, %v1431_v20, %v1446_v16  ;;  %v1453_v5 = vsel %vm3599_vm8, %v1433_v4, %v1452_v27  ;;  %v1997_v39 = vsel %vm475_vm4, %v1978_v37, %v1996_v13  ;;  %v1677_v41 = vld [vmem:[#allocation2 + $0x10] sm:$0xff]  ;;  %v1678_v42 = vld [vmem:[#allocation2 + $0x18] sm:$0xff] }
 0x2f3   : > { %v1436_v15 = vpack.c.bf16 %v1420_v52, %v1420_v52  ;;  %1445 = vst [vmem:[%s3063_s19 + $0x1] sm:$0x1] %v1444_v49  ;;  %1448 = vst [vmem:[%s3063_s19 + $0x2] sm:$0x1] %v1447_v56  ;;  %v1450_v25 = vsel %vm3599_vm8, %v1432_v55, %v1449_v1  ;;  %v1456_v26 = vsel %vm3599_vm8, %v1434_v14, %v1455_v54  ;;  %v1958_v11 = vrot.slane %v1952_v6, 1 }
 0x2f4   : > { %1454 = vst [vmem:[%s3063_s19 + $0x4] sm:$0x1] %v1453_v5  ;;  %v1459_v62 = vsel %vm3599_vm8, %v1435_v59, %v1458_v51  ;;  %1451 = vst [vmem:[%s3063_s19 + $0x3] sm:$0x1] %v1450_v25  ;;  %v1998_v35 = vsel %vm478_vm5, %v1982_v48, %v1997_v39  ;;  %v2844_v4 = vpack.c.bf16 %v1678_v42, %v1677_v41 }
 0x2f5   : > { %1457 = vst [vmem:[%s3063_s19 + $0x5] sm:$0x1] %v1456_v26  ;;  %1460 = vst [vmem:[%s3063_s19 + $0x6] sm:$0x1] %v1459_v62  ;;  %v1462_v7 = vsel %vm3599_vm8, %v1436_v15, %v1461_v61  ;;  %v1999_v44 = vsel %vm481_vm6, %v1986_v34, %v1998_v35 }
 0x2f6   : > { %1463 = vst [vmem:[%s3063_s19 + $0x7] sm:$0x1] %v1462_v7  ;;  %v2000_v38 = vsel %vm484_vm7, %v1990_v43, %v1999_v44 }
 0x2f7   : > { %v2001_v45 = vsel %vm487_vm9, %v1994_v58, %v2000_v38 }
 0x2f8   : > { %2824 = vmatpush3.msra.mxu1 %v2001_v45  ;;  %2835 = vmatprep.subr.mxu0 %v2001_v45 }
 0x2f9   : > { %2843 = vmatprep.subr.bf16.mxu1 %v2976_v0  ;;  %2836 = vmatpush3.msra.mxu0 %v2001_v45  ;;  %v1957_v0 = vrot.slane %v1948_v12, 1 }
 0x2fb   : > { %v1959_v10 = vsel %vm1956_vm2, %v1957_v0, %v1958_v11 }
 0x2fc   : > { %v1961_v20 = vsel %vm435_vm14, %v1959_v10, 0.0  ;;  %v2586_v10 = vld [vmem:[%s3063_s19 + $0x2] sm:$0x1] }
 0x331   : > { %v2259_v9 = vpop.trf.xlu1 }
 0x332   : > { %2837 = vmatprep.mubr.msk.f32.mxu0 %vm490_vm10, %v2259_v9 }
 0x335   : > { %v2260_v63 = vpop.trf.xlu1 }
 0x336   : > { %2838 = vmatmul.mubr.msk.f32.vlgmr.msra.gmra.mrb[6].mxu0 %vm490_vm10, %v2260_v63 }
 0x339   : > { %v2167_v46 = vpop.trf.xlu1 }
 0x33a   : > { %2185 = vperm.xlu1 %2898, %v2167_v46  }
 0x33d   : > { %v2168_v28 = vpop.trf.xlu1 }
 0x33e   : > { %2190 = vperm.xlu1 %2898, %v2168_v28   ;;  %v2580_v28 = vld [vmem:[%s3063_s19] sm:$0x1] }
 0x357   : > { %v1197_v19 = vpop.permute.xlu1 %1196 }
 0x358   : > { %v1204_v50 = vmul.f32 %v1197_v19, %v3472_v60  ;;  %v2583_v19 = vld [vmem:[%s3063_s19 + $0x1] sm:$0x1] }
 0x35a   : > { %v1367_v23 = vadd.f32 %v3491_v22, %v1204_v50 }
 0x35c   : > { %1369 = vst.msk [vmem:[#allocation2] sm:$0xff] %vm787_vm11, %v1367_v23 }
 0x38b   : > { %v1843_v16 = vpop.f32.mrb[4].mxu0 }
 0x38c   : > { %v1953_v27 = vsel %vm434_vm15, %v1843_v16, 0.0  ;;  %v2822_v60 = vpop.f32.mrb[5].mxu0 }
 0x38d   : > { %v1962_v22 = vadd.f32 %v1961_v20, %v1953_v27  ;;  %v2592_v20 = vld [vmem:[%s3063_s19 + $0x4] sm:$0x1] }
 0x38f   : > { %2826 = vmatmul.mubr.msk.f32.vlgmr.msra.gmra.mrb[6].mxu1 %vm490_vm10, %v1962_v22  ;;  %v2589_v22 = vld [vmem:[%s3063_s19 + $0x3] sm:$0x1] }
 0x390   : > { %2845 = vmatpush3.bf16.msra.mxu1 %v2844_v4  ;;  %2832 = vmatprep.mubr.msk.f32.mxu1 %vm2974_vm1, %v2973_v3  ;;  %vm2578_vm1 = vsmask.f32 7938 }
 0x391   : > { %vm3700_vm3 = vmand %vm1437_vm13, %vm2578_vm1 }
 0x397   : > { %2833 = vmatmul.mubr.msk.f32.vlgmr.msra.gmra.mrb[6].mxu1 %vm787_vm11, %v3586_v24 }
 0x3b9   : > { %v2186_v47 = vpop.permute.xlu1 %2185 }
 0x3ba   : > { %v2193_v51 = vmul.f32 %v2186_v47, %v1677_v41  ;;  %v2595_v47 = vld [vmem:[%s3063_s19 + $0x5] sm:$0x1] }
 0x3bd   : > { %v2191_v1 = vpop.permute.xlu1 %2190 }
 0x3be   : > { %v2194_v54 = vmul.f32 %v2191_v1, %v1678_v42  ;;  %v2598_v1 = vld [vmem:[%s3063_s19 + $0x6] sm:$0x1] }
 0x409   : > { %v2839_v52 = vpop.f32.mrb[6].mxu0 }
 0x40a   : > { %v2357_v55 = vadd.f32 %v2839_v52, %v2194_v54  ;;  %v2347_v29 = vpop.f32.mrb[7].mxu0 }
 0x40b   : > { %v2356_v30 = vadd.f32 %v2347_v29, %v2193_v51  ;;  %v2601_v29 = vld [vmem:[%s3063_s19 + $0x7] sm:$0x1] }
 0x40c   : > { %2359 = vst.msk [vmem:[#allocation2 + $0x18] sm:$0xff] %vm787_vm11, %v2357_v55 }
 0x40d   : > { %2358 = vst.msk [vmem:[#allocation2 + $0x10] sm:$0xff] %vm787_vm11, %v2356_v30 }
 0x46a   : > { %v2142_v14 = vpop.f32.mrb[6].mxu1 }
 0x46b   : > { %v2361_v59 = vcombine.high %v2142_v14, %v2142_v14  ;;  %v2368_v49 = vrot.slane %v2142_v14, %v3593_v36  ;;  %v2834_v3 = vpop.f32.mrb[7].mxu1 }
 0x46d   : > { %v2375_v56 = vrot.slane %v2361_v59, %v3593_v36  ;;  %v2376_v24 = vcombine.high %v2368_v49, %v2368_v49  ;;  %v2384_v5 = vrot.slane %v2368_v49, %v3593_v36 }
 0x46f   : > { %v2377_v61 = vcombine.high %v2375_v56, %v2375_v56  ;;  %v2391_v15 = vrot.slane %v2375_v56, %v3593_v36  ;;  %v2398_v25 = vrot.slane %v2376_v24, %v3593_v36  ;;  %v2406_v26 = vcombine.high %v2384_v5, %v2384_v5 }
 0x470   : > { %v2418_v62 = vpack.c.bf16 %v2384_v5, %v2384_v5 }
 0x471   : > { %v2405_v7 = vrot.slane %v2377_v61, %v3593_v36  ;;  %v2407_v17 = vcombine.high %v2391_v15, %v2391_v15  ;;  %v2408_v2 = vcombine.high %v2398_v25, %v2398_v25  ;;  %v2419_v33 = vpack.c.bf16 %v2398_v25, %v2398_v25 }
 0x472   : > { %v2420_v53 = vpack.c.bf16 %v2406_v26, %v2406_v26  ;;  %v2422_v32 = vpack.c.bf16 %v2391_v15, %v2391_v15  ;;  %v2440_v21 = vrot.slane %v2418_v62, %v3593_v36 }
 0x473   : > { %v2409_v31 = vcombine.high %v2405_v7, %v2405_v7  ;;  %v2421_v37 = vpack.c.bf16 %v2408_v2, %v2408_v2  ;;  %v2423_v40 = vpack.c.bf16 %v2405_v7, %v2405_v7  ;;  %v2424_v18 = vpack.c.bf16 %v2407_v17, %v2407_v17 }
 0x474   : > { %v2447_v48 = vrot.slane %v2440_v21, %v3593_v36  ;;  %v2454_v13 = vrot.slane %v2419_v33, %v3593_v36  ;;  %v2468_v8 = vrot.slane %v2420_v53, %v3593_v36  ;;  %v2496_v34 = vrot.slane %v2422_v32, %v3593_v36 }
 0x475   : > { %v2425_v43 = vpack.c.bf16 %v2409_v31, %v2409_v31  ;;  %v2482_v58 = vrot.slane %v2421_v37, %v3593_v36  ;;  %v2510_v39 = vrot.slane %v2423_v40, %v3593_v36  ;;  %v2524_v35 = vrot.slane %v2424_v18, %v3593_v36 }
 0x476   : > { %v2461_v44 = vrot.slane %v2454_v13, %v3593_v36  ;;  %v2475_v38 = vrot.slane %v2468_v8, %v3593_v36  ;;  %v2503_v45 = vrot.slane %v2496_v34, %v3593_v36  ;;  %v2547_v12 = vshll.u32 %v2447_v48, 16 }
 0x477   : > { %v2489_v6 = vrot.slane %v2482_v58, %v3593_v36  ;;  %v2517_v9 = vrot.slane %v2510_v39, %v3593_v36  ;;  %v2531_v63 = vrot.slane %v2524_v35, %v3593_v36  ;;  %v2538_v46 = vrot.slane %v2425_v43, %v3593_v36 }
 0x478   : > { %v2550_v50 = vshll.u32 %v2461_v44, 16  ;;  %v2553_v23 = vshll.u32 %v2475_v38, 16  ;;  %v2559_v0 = vshll.u32 %v2503_v45, 16  ;;  %v2581_v11 = vsel %vm3700_vm3, %v2547_v12, %v2580_v28 }
 0x479   : > { %v2545_v41 = vrot.slane %v2538_v46, %v3593_v36  ;;  %v2556_v42 = vshll.u32 %v2489_v6, 16  ;;  %v2562_v16 = vshll.u32 %v2517_v9, 16  ;;  %v2565_v27 = vshll.u32 %v2531_v63, 16  ;;  %2582 = vst [vmem:[%s3063_s19] sm:$0x1] %v2581_v11 }
 0x47a   : > { %v2584_v60 = vsel %vm3700_vm3, %v2550_v50, %v2583_v19  ;;  %v2587_v4 = vsel %vm3700_vm3, %v2553_v23, %v2586_v10  ;;  %v2593_v36 = vsel %vm3700_vm3, %v2559_v0, %v2592_v20 }
 0x47b   : > { %v2568_v54 = vshll.u32 %v2545_v41, 16  ;;  %2585 = vst [vmem:[%s3063_s19 + $0x1] sm:$0x1] %v2584_v60  ;;  %2588 = vst [vmem:[%s3063_s19 + $0x2] sm:$0x1] %v2587_v4  ;;  %v2590_v51 = vsel %vm3700_vm3, %v2556_v42, %v2589_v22  ;;  %v2596_v52 = vsel %vm3700_vm3, %v2562_v16, %v2595_v47  ;;  %v2599_v55 = vsel %vm3700_vm3, %v2565_v27, %v2598_v1 }
 0x47c   : > { %2594 = vst [vmem:[%s3063_s19 + $0x4] sm:$0x1] %v2593_v36  ;;  %2591 = vst [vmem:[%s3063_s19 + $0x3] sm:$0x1] %v2590_v51 }
 0x47d   : > { %2597 = vst [vmem:[%s3063_s19 + $0x5] sm:$0x1] %v2596_v52  ;;  %2600 = vst [vmem:[%s3063_s19 + $0x6] sm:$0x1] %v2599_v55  ;;  %v2602_v30 = vsel %vm3700_vm3, %v2568_v54, %v2601_v29 }
 0x47e   : > { %2603 = vst [vmem:[%s3063_s19 + $0x7] sm:$0x1] %v2602_v30 }
 0x47f PF: > { %s15_s22 = sadd.s32 1, %s2970_s22   ;;  %s3798_s18 = smov %s2962_s20 }
 0x480   : > { %p12_p8 = scmp.ge.s32.totalorder %s15_s22, 8   ;;  %s3799_s19 = smov %s2966_s21 }
 0x481   : > { %s3800_s20 = smov %s3803_s23  ;;  %s3801_s21 = smov %s3807_s24 }
 0x482   :  { %14 = sbr.rel (!%p12_p8) target bundleno = 3 (0x3), region = 84 }

</bundles_post_ra>
